<compile_context>
chip_gen: v7x
topology: tpu7x:2x2x1
jax: 0.10.0
libtpu: 0.0.40
codegen_flags: <defaults>
</compile_context>

<pallas_src>
import math

import jax
import jax.numpy as jnp
from jax.experimental import pallas as pl
from jax.experimental.pallas import tpu as pltpu

# ----------------------------- config ---------------------------------------
B, S, H = 2, 8, 32          # batch, seq, hidden
NH, DH = 4, 8               # heads, head dim (NH*DH == H)
FF = 64                     # intermediate size
L = 2                       # number of encoder layers
LN_EPS = 1e-12              # RoBERTa LayerNorm eps


# ----------------------------- in-kernel helpers ------------------------------
def _layernorm(y, gamma, beta):
    mean = jnp.mean(y, axis=-1, keepdims=True)
    ctr = y - mean
    var = jnp.mean(ctr * ctr, axis=-1, keepdims=True)
    return ctr * jax.lax.rsqrt(var + LN_EPS) * gamma + beta


def _gelu(y):
    # TODO(synk): HF RoBERTa "gelu" is the exact erf-based GELU; tanh approx
    # (~1e-3 rel. diff) used here for a guaranteed Mosaic lowering path.
    c = math.sqrt(2.0 / math.pi)
    return 0.5 * y * (1.0 + jnp.tanh(c * (y + 0.044715 * y * y * y)))


# ----------------------------- fused encoder kernel ---------------------------
def _encoder_kernel(x_ref, mask_ref,
                    wqkv_ref, bqkv_ref, wo_ref, bo_ref, ln1g_ref, ln1b_ref,
                    wi_ref, bi_ref, wf_ref, bf_ref, ln2g_ref, ln2b_ref,
                    o_ref):
    """Whole encoder in one invocation; L layers statically unrolled."""
    x = x_ref[...]                                   # (B*S, H) hidden slab
    mask = mask_ref[...]                             # (B, 1, S) additive key mask
    scale = 1.0 / math.sqrt(DH)

    for layer in range(L):                           # static unroll, weights resident
        # ---- fused QKV projection: one MXU pass, 3H-lane-wide output ---------
        qkv = jnp.dot(x, wqkv_ref[layer],
                      preferred_element_type=jnp.float32) + bqkv_ref[layer]

        # ---- self-attention: batched over B, heads merged via wo row-slices --
        wo = wo_ref[layer]                           # (H, H)
        attn = bo_ref[layer]                         # (1, H), broadcasts on add
        for h in range(NH):
            c0 = h * DH
            q = qkv[:, c0:c0 + DH].reshape(B, S, DH)
            k = qkv[:, H + c0:H + c0 + DH].reshape(B, S, DH)
            v = qkv[:, 2 * H + c0:2 * H + c0 + DH].reshape(B, S, DH)

            s = jnp.einsum('bqd,bkd->bqk', q, k,
                           preferred_element_type=jnp.float32) * scale
            s = s + mask                             # broadcast over query dim
            s = s - jnp.max(s, axis=-1, keepdims=True)   # stable softmax
            p = jnp.exp(s)
            denom = jnp.sum(p, axis=-1, keepdims=True)
            p = p * pl.reciprocal(denom, approx=True)    # EUP, not VPU div

            ctx_h = jnp.einsum('bqk,bkd->bqd', p, v,
                               preferred_element_type=jnp.float32)
            # Merge heads through the output projection (no lane concatenation):
            # concat_h(ctx_h) @ wo == sum_h ctx_h @ wo[h*DH:(h+1)*DH, :]
            attn = attn + jnp.dot(ctx_h.reshape(B * S, DH),
                                  wo[c0:c0 + DH, :],
                                  preferred_element_type=jnp.float32)

        # ---- output projection residual + LayerNorm (fused) ------------------
        x1 = _layernorm(attn + x, ln1g_ref[layer], ln1b_ref[layer])

        # ---- feed-forward (GELU) + residual + LayerNorm (fused) --------------
        ff = jnp.dot(x1, wi_ref[layer],
                     preferred_element_type=jnp.float32) + bi_ref[layer]
        ff = _gelu(ff)
        ff = jnp.dot(ff, wf_ref[layer],
                     preferred_element_type=jnp.float32) + bf_ref[layer]
        x = _layernorm(ff + x1, ln2g_ref[layer], ln2b_ref[layer])

    o_ref[...] = x                                   # single writeback


# ----------------------------- wrapper ----------------------------------------
@jax.jit
def roberta_encoder(embedding_output, extended_attention_mask, params):
    """embedding_output: (B, S, H); extended_attention_mask: (B,1,1,S) additive."""
    x2d = embedding_output.astype(jnp.float32).reshape(B * S, H)
    mask = extended_attention_mask.astype(jnp.float32).reshape(B, 1, S)

    out = pl.pallas_call(
        _encoder_kernel,
        out_shape=jax.ShapeDtypeStruct((B * S, H), jnp.float32),
        # No grid: everything (activations + ~68 KB of stacked weights) lives in
        # VMEM for the whole call.  vmem_limit is the knob to raise when scaling
        # to real dims / per-layer weight streaming.
        compiler_params=pltpu.CompilerParams(vmem_limit_bytes=64 * 1024 * 1024),
    )(x2d, mask,
      params["wqkv"], params["bqkv"], params["wo"], params["bo"],
      params["ln1_g"], params["ln1_b"],
      params["wi"], params["bi"], params["wf"], params["bf"],
      params["ln2_g"], params["ln2_b"])

    # HF encoder returns (last_hidden_state, ...); we return the hidden states.
    return out.reshape(B, S, H)


# ----------------------------- parameters -------------------------------------
def init_params(key):
    names = ("wqkv", "bqkv", "wo", "bo", "ln1_g", "ln1_b",
             "wi", "bi", "wf", "bf", "ln2_g", "ln2_b")
    stacks = {n: [] for n in names}
    for _ in range(L):
        keys = jax.random.split(key, 7)
        key = keys[0]

        def w(k, shape, scale=0.02):
            return scale * jax.random.normal(k, shape, dtype=jnp.float32)

        wq, wk, wv = w(keys[1], (H, H)), w(keys[2], (H, H)), w(keys[3], (H, H))
        stacks["wqkv"].append(jnp.concatenate([wq, wk, wv], axis=1))   # (H, 3H)
        stacks["bqkv"].append(jnp.zeros((1, 3 * H), jnp.float32))
        stacks["wo"].append(w(keys[4], (H, H)))
        stacks["bo"].append(jnp.zeros((1, H), jnp.float32))
        stacks["ln1_g"].append(jnp.ones((1, H), jnp.float32))
        stacks["ln1_b"].append(jnp.zeros((1, H), jnp.float32))
        stacks["wi"].append(w(keys[5], (H, FF)))
        stacks["bi"].append(jnp.zeros((1, FF), jnp.float32))
        stacks["wf"].append(w(keys[6], (FF, H)))
        stacks["bf"].append(jnp.zeros((1, H), jnp.float32))
        stacks["ln2_g"].append(jnp.ones((1, H), jnp.float32))
        stacks["ln2_b"].append(jnp.zeros((1, H), jnp.float32))
    return {n: jnp.stack(v, axis=0) for n, v in stacks.items()}


# ----------------------------- main --------------------------------------------
if __name__ == "__main__":
    key = jax.random.PRNGKey(0)
    k_emb, k_par = jax.random.split(key)

    embedding_output = jax.random.normal(k_emb, (B, S, H), dtype=jnp.float32)

    # attention mask: batch 1 has its last two tokens padded
    attn_mask = jnp.ones((B, S), dtype=jnp.float32)
    attn_mask = attn_mask.at[1, S - 2:].set(0.0)
    extended_attention_mask = (1.0 - attn_mask)[:, None, None, :] * -10000.0  # (B,1,1,S)

    params = init_params(k_par)

    out = roberta_encoder(embedding_output, extended_attention_mask, params)
    out = jax.block_until_ready(out)

    assert out.shape == (B, S, H)
    assert bool(jnp.all(jnp.isfinite(out)))
    print("KERNEL_OK")
</pallas_src>

<mosaic_0001>
module attributes {stable_mosaic.version = 11 : i64} {
  func.func @_encoder_kernel(%arg0: memref<16x32xf32, #tpu.memory_space<vmem>>, %arg1: memref<2x1x8xf32, #tpu.memory_space<vmem>>, %arg2: memref<2x32x96xf32, #tpu.memory_space<vmem>>, %arg3: memref<2x1x96xf32, #tpu.memory_space<vmem>>, %arg4: memref<2x32x32xf32, #tpu.memory_space<vmem>>, %arg5: memref<2x1x32xf32, #tpu.memory_space<vmem>>, %arg6: memref<2x1x32xf32, #tpu.memory_space<vmem>>, %arg7: memref<2x1x32xf32, #tpu.memory_space<vmem>>, %arg8: memref<2x32x64xf32, #tpu.memory_space<vmem>>, %arg9: memref<2x1x64xf32, #tpu.memory_space<vmem>>, %arg10: memref<2x64x32xf32, #tpu.memory_space<vmem>>, %arg11: memref<2x1x32xf32, #tpu.memory_space<vmem>>, %arg12: memref<2x1x32xf32, #tpu.memory_space<vmem>>, %arg13: memref<2x1x32xf32, #tpu.memory_space<vmem>>, %arg14: memref<16x32xf32, #tpu.memory_space<vmem>>) attributes {dimension_semantics = [], scalar_prefetch = 0 : i64, scratch_operands = 0 : i64, tpu.core_type = #tpu.core_type<tc>} {
    %c0 = arith.constant 0 : index
    %c0_0 = arith.constant 0 : index
    %0 = vector.load %arg0[%c0, %c0_0] : memref<16x32xf32, #tpu.memory_space<vmem>>, vector<16x32xf32>
    %c0_1 = arith.constant 0 : index
    %c0_2 = arith.constant 0 : index
    %c0_3 = arith.constant 0 : index
    %1 = vector.load %arg1[%c0_1, %c0_2, %c0_3] : memref<2x1x8xf32, #tpu.memory_space<vmem>>, vector<2x1x8xf32>
    %c0_4 = arith.constant 0 : index
    %c0_5 = arith.constant 0 : index
    %c0_6 = arith.constant 0 : index
    %2 = vector.load %arg2[%c0_4, %c0_5, %c0_6] : memref<2x32x96xf32, #tpu.memory_space<vmem>>, vector<1x32x96xf32>
    %3 = vector.shape_cast %2 : vector<1x32x96xf32> to vector<32x96xf32>
    %cst = arith.constant dense<0.000000e+00> : vector<16x96xf32>
    %4 = tpu.matmul %0, %3, %cst {dimension_numbers = #tpu.dot_dimension_numbers<[1], [0], [0], [1], [0, 0, 1, 1], [], []>} : vector<16x32xf32>, vector<32x96xf32>, vector<16x96xf32> -> vector<16x96xf32>
    %c0_7 = arith.constant 0 : index
    %c0_8 = arith.constant 0 : index
    %c0_9 = arith.constant 0 : index
    %5 = vector.load %arg3[%c0_7, %c0_8, %c0_9] : memref<2x1x96xf32, #tpu.memory_space<vmem>>, vector<1x1x96xf32>
    %6 = vector.shape_cast %5 : vector<1x1x96xf32> to vector<1x96xf32>
    %7 = vector.broadcast %6 : vector<1x96xf32> to vector<16x96xf32>
    %8 = arith.addf %4, %7 : vector<16x96xf32>
    %c0_10 = arith.constant 0 : index
    %c0_11 = arith.constant 0 : index
    %c0_12 = arith.constant 0 : index
    %9 = vector.load %arg4[%c0_10, %c0_11, %c0_12] : memref<2x32x32xf32, #tpu.memory_space<vmem>>, vector<1x32x32xf32>
    %10 = vector.shape_cast %9 : vector<1x32x32xf32> to vector<32x32xf32>
    %c0_13 = arith.constant 0 : index
    %c0_14 = arith.constant 0 : index
    %c0_15 = arith.constant 0 : index
    %11 = vector.load %arg5[%c0_13, %c0_14, %c0_15] : memref<2x1x32xf32, #tpu.memory_space<vmem>>, vector<1x1x32xf32>
    %12 = vector.shape_cast %11 : vector<1x1x32xf32> to vector<1x32xf32>
    %13 = vector.extract_strided_slice %8 {offsets = [0, 0], sizes = [16, 8], strides = [1, 1]} : vector<16x96xf32> to vector<16x8xf32>
    %14 = vector.shape_cast %13 : vector<16x8xf32> to vector<2x8x8xf32>
    %15 = vector.extract_strided_slice %8 {offsets = [0, 32], sizes = [16, 8], strides = [1, 1]} : vector<16x96xf32> to vector<16x8xf32>
    %16 = vector.shape_cast %15 : vector<16x8xf32> to vector<2x8x8xf32>
    %17 = vector.extract_strided_slice %8 {offsets = [0, 64], sizes = [16, 8], strides = [1, 1]} : vector<16x96xf32> to vector<16x8xf32>
    %18 = vector.shape_cast %17 : vector<16x8xf32> to vector<2x8x8xf32>
    "tpu.trace_start"() <{level = 10 : i32, message = "bqd,bkd->bqk"}> : () -> ()
    %cst_16 = arith.constant dense<0.000000e+00> : vector<2x8x8xf32>
    %19 = tpu.matmul %14, %16, %cst_16 {dimension_numbers = #tpu.dot_dimension_numbers<[2], [2], [1], [1], [0, 0, 0, 1, 1, 1], [0], [0]>} : vector<2x8x8xf32>, vector<2x8x8xf32>, vector<2x8x8xf32> -> vector<2x8x8xf32>
    "tpu.trace_stop"() : () -> ()
    %cst_17 = arith.constant 0.353553385 : f32
    %20 = vector.broadcast %cst_17 : f32 to vector<2x8x8xf32>
    %21 = arith.mulf %19, %20 : vector<2x8x8xf32>
    %22 = vector.broadcast %1 : vector<2x1x8xf32> to vector<2x8x8xf32>
    %23 = arith.addf %21, %22 : vector<2x8x8xf32>
    %cst_18 = arith.constant dense<0xFF800000> : vector<2x8xf32>
    %24 = vector.multi_reduction <maximumf>, %23, %cst_18 [2] : vector<2x8x8xf32> to vector<2x8xf32>
    %25 = vector.shape_cast %24 : vector<2x8xf32> to vector<2x8x1xf32>
    %26 = vector.broadcast %25 : vector<2x8x1xf32> to vector<2x8x8xf32>
    %27 = arith.subf %23, %26 : vector<2x8x8xf32>
    %28 = math.exp %27 : vector<2x8x8xf32>
    %cst_19 = arith.constant dense<0.000000e+00> : vector<2x8xf32>
    %29 = vector.multi_reduction <add>, %28, %cst_19 [2] : vector<2x8x8xf32> to vector<2x8xf32>
    %30 = vector.shape_cast %29 : vector<2x8xf32> to vector<2x8x1xf32>
    %31 = tpu.reciprocal %30 {approx = true} : vector<2x8x1xf32> -> vector<2x8x1xf32>
    %32 = vector.broadcast %31 : vector<2x8x1xf32> to vector<2x8x8xf32>
    %33 = arith.mulf %28, %32 : vector<2x8x8xf32>
    "tpu.trace_start"() <{level = 10 : i32, message = "bqk,bkd->bqd"}> : () -> ()
    %cst_20 = arith.constant dense<0.000000e+00> : vector<2x8x8xf32>
    %34 = tpu.matmul %33, %18, %cst_20 {dimension_numbers = #tpu.dot_dimension_numbers<[2], [1], [1], [2], [0, 0, 0, 1, 1, 2], [0], [0]>} : vector<2x8x8xf32>, vector<2x8x8xf32>, vector<2x8x8xf32> -> vector<2x8x8xf32>
    "tpu.trace_stop"() : () -> ()
    %35 = vector.shape_cast %34 : vector<2x8x8xf32> to vector<16x8xf32>
    %36 = vector.extract_strided_slice %10 {offsets = [0, 0], sizes = [8, 32], strides = [1, 1]} : vector<32x32xf32> to vector<8x32xf32>
    %cst_21 = arith.constant dense<0.000000e+00> : vector<16x32xf32>
    %37 = tpu.matmul %35, %36, %cst_21 {dimension_numbers = #tpu.dot_dimension_numbers<[1], [0], [0], [1], [0, 0, 1, 1], [], []>} : vector<16x8xf32>, vector<8x32xf32>, vector<16x32xf32> -> vector<16x32xf32>
    %38 = vector.broadcast %12 : vector<1x32xf32> to vector<16x32xf32>
    %39 = arith.addf %38, %37 : vector<16x32xf32>
    %40 = vector.extract_strided_slice %8 {offsets = [0, 8], sizes = [16, 8], strides = [1, 1]} : vector<16x96xf32> to vector<16x8xf32>
    %41 = vector.shape_cast %40 : vector<16x8xf32> to vector<2x8x8xf32>
    %42 = vector.extract_strided_slice %8 {offsets = [0, 40], sizes = [16, 8], strides = [1, 1]} : vector<16x96xf32> to vector<16x8xf32>
    %43 = vector.shape_cast %42 : vector<16x8xf32> to vector<2x8x8xf32>
    %44 = vector.extract_strided_slice %8 {offsets = [0, 72], sizes = [16, 8], strides = [1, 1]} : vector<16x96xf32> to vector<16x8xf32>
    %45 = vector.shape_cast %44 : vector<16x8xf32> to vector<2x8x8xf32>
    "tpu.trace_start"() <{level = 10 : i32, message = "bqd,bkd->bqk"}> : () -> ()
    %cst_22 = arith.constant dense<0.000000e+00> : vector<2x8x8xf32>
    %46 = tpu.matmul %41, %43, %cst_22 {dimension_numbers = #tpu.dot_dimension_numbers<[2], [2], [1], [1], [0, 0, 0, 1, 1, 1], [0], [0]>} : vector<2x8x8xf32>, vector<2x8x8xf32>, vector<2x8x8xf32> -> vector<2x8x8xf32>
    "tpu.trace_stop"() : () -> ()
    %cst_23 = arith.constant 0.353553385 : f32
    %47 = vector.broadcast %cst_23 : f32 to vector<2x8x8xf32>
    %48 = arith.mulf %46, %47 : vector<2x8x8xf32>
    %49 = vector.broadcast %1 : vector<2x1x8xf32> to vector<2x8x8xf32>
    %50 = arith.addf %48, %49 : vector<2x8x8xf32>
    %cst_24 = arith.constant dense<0xFF800000> : vector<2x8xf32>
    %51 = vector.multi_reduction <maximumf>, %50, %cst_24 [2] : vector<2x8x8xf32> to vector<2x8xf32>
    %52 = vector.shape_cast %51 : vector<2x8xf32> to vector<2x8x1xf32>
    %53 = vector.broadcast %52 : vector<2x8x1xf32> to vector<2x8x8xf32>
    %54 = arith.subf %50, %53 : vector<2x8x8xf32>
    %55 = math.exp %54 : vector<2x8x8xf32>
    %cst_25 = arith.constant dense<0.000000e+00> : vector<2x8xf32>
    %56 = vector.multi_reduction <add>, %55, %cst_25 [2] : vector<2x8x8xf32> to vector<2x8xf32>
    %57 = vector.shape_cast %56 : vector<2x8xf32> to vector<2x8x1xf32>
    %58 = tpu.reciprocal %57 {approx = true} : vector<2x8x1xf32> -> vector<2x8x1xf32>
    %59 = vector.broadcast %58 : vector<2x8x1xf32> to vector<2x8x8xf32>
    %60 = arith.mulf %55, %59 : vector<2x8x8xf32>
    "tpu.trace_start"() <{level = 10 : i32, message = "bqk,bkd->bqd"}> : () -> ()
    %cst_26 = arith.constant dense<0.000000e+00> : vector<2x8x8xf32>
    %61 = tpu.matmul %60, %45, %cst_26 {dimension_numbers = #tpu.dot_dimension_numbers<[2], [1], [1], [2], [0, 0, 0, 1, 1, 2], [0], [0]>} : vector<2x8x8xf32>, vector<2x8x8xf32>, vector<2x8x8xf32> -> vector<2x8x8xf32>
    "tpu.trace_stop"() : () -> ()
    %62 = vector.shape_cast %61 : vector<2x8x8xf32> to vector<16x8xf32>
    %63 = vector.extract_strided_slice %10 {offsets = [8, 0], sizes = [8, 32], strides = [1, 1]} : vector<32x32xf32> to vector<8x32xf32>
    %cst_27 = arith.constant dense<0.000000e+00> : vector<16x32xf32>
    %64 = tpu.matmul %62, %63, %cst_27 {dimension_numbers = #tpu.dot_dimension_numbers<[1], [0], [0], [1], [0, 0, 1, 1], [], []>} : vector<16x8xf32>, vector<8x32xf32>, vector<16x32xf32> -> vector<16x32xf32>
    %65 = arith.addf %39, %64 : vector<16x32xf32>
    %66 = vector.extract_strided_slice %8 {offsets = [0, 16], sizes = [16, 8], strides = [1, 1]} : vector<16x96xf32> to vector<16x8xf32>
    %67 = vector.shape_cast %66 : vector<16x8xf32> to vector<2x8x8xf32>
    %68 = vector.extract_strided_slice %8 {offsets = [0, 48], sizes = [16, 8], strides = [1, 1]} : vector<16x96xf32> to vector<16x8xf32>
    %69 = vector.shape_cast %68 : vector<16x8xf32> to vector<2x8x8xf32>
    %70 = vector.extract_strided_slice %8 {offsets = [0, 80], sizes = [16, 8], strides = [1, 1]} : vector<16x96xf32> to vector<16x8xf32>
    %71 = vector.shape_cast %70 : vector<16x8xf32> to vector<2x8x8xf32>
    "tpu.trace_start"() <{level = 10 : i32, message = "bqd,bkd->bqk"}> : () -> ()
    %cst_28 = arith.constant dense<0.000000e+00> : vector<2x8x8xf32>
    %72 = tpu.matmul %67, %69, %cst_28 {dimension_numbers = #tpu.dot_dimension_numbers<[2], [2], [1], [1], [0, 0, 0, 1, 1, 1], [0], [0]>} : vector<2x8x8xf32>, vector<2x8x8xf32>, vector<2x8x8xf32> -> vector<2x8x8xf32>
    "tpu.trace_stop"() : () -> ()
    %cst_29 = arith.constant 0.353553385 : f32
    %73 = vector.broadcast %cst_29 : f32 to vector<2x8x8xf32>
    %74 = arith.mulf %72, %73 : vector<2x8x8xf32>
    %75 = vector.broadcast %1 : vector<2x1x8xf32> to vector<2x8x8xf32>
    %76 = arith.addf %74, %75 : vector<2x8x8xf32>
    %cst_30 = arith.constant dense<0xFF800000> : vector<2x8xf32>
    %77 = vector.multi_reduction <maximumf>, %76, %cst_30 [2] : vector<2x8x8xf32> to vector<2x8xf32>
    %78 = vector.shape_cast %77 : vector<2x8xf32> to vector<2x8x1xf32>
    %79 = vector.broadcast %78 : vector<2x8x1xf32> to vector<2x8x8xf32>
    %80 = arith.subf %76, %79 : vector<2x8x8xf32>
    %81 = math.exp %80 : vector<2x8x8xf32>
    %cst_31 = arith.constant dense<0.000000e+00> : vector<2x8xf32>
    %82 = vector.multi_reduction <add>, %81, %cst_31 [2] : vector<2x8x8xf32> to vector<2x8xf32>
    %83 = vector.shape_cast %82 : vector<2x8xf32> to vector<2x8x1xf32>
    %84 = tpu.reciprocal %83 {approx = true} : vector<2x8x1xf32> -> vector<2x8x1xf32>
    %85 = vector.broadcast %84 : vector<2x8x1xf32> to vector<2x8x8xf32>
    %86 = arith.mulf %81, %85 : vector<2x8x8xf32>
    "tpu.trace_start"() <{level = 10 : i32, message = "bqk,bkd->bqd"}> : () -> ()
    %cst_32 = arith.constant dense<0.000000e+00> : vector<2x8x8xf32>
    %87 = tpu.matmul %86, %71, %cst_32 {dimension_numbers = #tpu.dot_dimension_numbers<[2], [1], [1], [2], [0, 0, 0, 1, 1, 2], [0], [0]>} : vector<2x8x8xf32>, vector<2x8x8xf32>, vector<2x8x8xf32> -> vector<2x8x8xf32>
    "tpu.trace_stop"() : () -> ()
    %88 = vector.shape_cast %87 : vector<2x8x8xf32> to vector<16x8xf32>
    %89 = vector.extract_strided_slice %10 {offsets = [16, 0], sizes = [8, 32], strides = [1, 1]} : vector<32x32xf32> to vector<8x32xf32>
    %cst_33 = arith.constant dense<0.000000e+00> : vector<16x32xf32>
    %90 = tpu.matmul %88, %89, %cst_33 {dimension_numbers = #tpu.dot_dimension_numbers<[1], [0], [0], [1], [0, 0, 1, 1], [], []>} : vector<16x8xf32>, vector<8x32xf32>, vector<16x32xf32> -> vector<16x32xf32>
    %91 = arith.addf %65, %90 : vector<16x32xf32>
    %92 = vector.extract_strided_slice %8 {offsets = [0, 24], sizes = [16, 8], strides = [1, 1]} : vector<16x96xf32> to vector<16x8xf32>
    %93 = vector.shape_cast %92 : vector<16x8xf32> to vector<2x8x8xf32>
    %94 = vector.extract_strided_slice %8 {offsets = [0, 56], sizes = [16, 8], strides = [1, 1]} : vector<16x96xf32> to vector<16x8xf32>
    %95 = vector.shape_cast %94 : vector<16x8xf32> to vector<2x8x8xf32>
    %96 = vector.extract_strided_slice %8 {offsets = [0, 88], sizes = [16, 8], strides = [1, 1]} : vector<16x96xf32> to vector<16x8xf32>
    %97 = vector.shape_cast %96 : vector<16x8xf32> to vector<2x8x8xf32>
    "tpu.trace_start"() <{level = 10 : i32, message = "bqd,bkd->bqk"}> : () -> ()
    %cst_34 = arith.constant dense<0.000000e+00> : vector<2x8x8xf32>
    %98 = tpu.matmul %93, %95, %cst_34 {dimension_numbers = #tpu.dot_dimension_numbers<[2], [2], [1], [1], [0, 0, 0, 1, 1, 1], [0], [0]>} : vector<2x8x8xf32>, vector<2x8x8xf32>, vector<2x8x8xf32> -> vector<2x8x8xf32>
    "tpu.trace_stop"() : () -> ()
    %cst_35 = arith.constant 0.353553385 : f32
    %99 = vector.broadcast %cst_35 : f32 to vector<2x8x8xf32>
    %100 = arith.mulf %98, %99 : vector<2x8x8xf32>
    %101 = vector.broadcast %1 : vector<2x1x8xf32> to vector<2x8x8xf32>
    %102 = arith.addf %100, %101 : vector<2x8x8xf32>
    %cst_36 = arith.constant dense<0xFF800000> : vector<2x8xf32>
    %103 = vector.multi_reduction <maximumf>, %102, %cst_36 [2] : vector<2x8x8xf32> to vector<2x8xf32>
    %104 = vector.shape_cast %103 : vector<2x8xf32> to vector<2x8x1xf32>
    %105 = vector.broadcast %104 : vector<2x8x1xf32> to vector<2x8x8xf32>
    %106 = arith.subf %102, %105 : vector<2x8x8xf32>
    %107 = math.exp %106 : vector<2x8x8xf32>
    %cst_37 = arith.constant dense<0.000000e+00> : vector<2x8xf32>
    %108 = vector.multi_reduction <add>, %107, %cst_37 [2] : vector<2x8x8xf32> to vector<2x8xf32>
    %109 = vector.shape_cast %108 : vector<2x8xf32> to vector<2x8x1xf32>
    %110 = tpu.reciprocal %109 {approx = true} : vector<2x8x1xf32> -> vector<2x8x1xf32>
    %111 = vector.broadcast %110 : vector<2x8x1xf32> to vector<2x8x8xf32>
    %112 = arith.mulf %107, %111 : vector<2x8x8xf32>
    "tpu.trace_start"() <{level = 10 : i32, message = "bqk,bkd->bqd"}> : () -> ()
    %cst_38 = arith.constant dense<0.000000e+00> : vector<2x8x8xf32>
    %113 = tpu.matmul %112, %97, %cst_38 {dimension_numbers = #tpu.dot_dimension_numbers<[2], [1], [1], [2], [0, 0, 0, 1, 1, 2], [0], [0]>} : vector<2x8x8xf32>, vector<2x8x8xf32>, vector<2x8x8xf32> -> vector<2x8x8xf32>
    "tpu.trace_stop"() : () -> ()
    %114 = vector.shape_cast %113 : vector<2x8x8xf32> to vector<16x8xf32>
    %115 = vector.extract_strided_slice %10 {offsets = [24, 0], sizes = [8, 32], strides = [1, 1]} : vector<32x32xf32> to vector<8x32xf32>
    %cst_39 = arith.constant dense<0.000000e+00> : vector<16x32xf32>
    %116 = tpu.matmul %114, %115, %cst_39 {dimension_numbers = #tpu.dot_dimension_numbers<[1], [0], [0], [1], [0, 0, 1, 1], [], []>} : vector<16x8xf32>, vector<8x32xf32>, vector<16x32xf32> -> vector<16x32xf32>
    %117 = arith.addf %91, %116 : vector<16x32xf32>
    %118 = arith.addf %117, %0 : vector<16x32xf32>
    %c0_40 = arith.constant 0 : index
    %c0_41 = arith.constant 0 : index
    %c0_42 = arith.constant 0 : index
    %119 = vector.load %arg6[%c0_40, %c0_41, %c0_42] : memref<2x1x32xf32, #tpu.memory_space<vmem>>, vector<1x1x32xf32>
    %120 = vector.shape_cast %119 : vector<1x1x32xf32> to vector<1x32xf32>
    %c0_43 = arith.constant 0 : index
    %c0_44 = arith.constant 0 : index
    %c0_45 = arith.constant 0 : index
    %121 = vector.load %arg7[%c0_43, %c0_44, %c0_45] : memref<2x1x32xf32, #tpu.memory_space<vmem>>, vector<1x1x32xf32>
    %122 = vector.shape_cast %121 : vector<1x1x32xf32> to vector<1x32xf32>
    %cst_46 = arith.constant dense<0.000000e+00> : vector<16xf32>
    %123 = vector.multi_reduction <add>, %118, %cst_46 [1] : vector<16x32xf32> to vector<16xf32>
    %124 = vector.shape_cast %123 : vector<16xf32> to vector<16x1xf32>
    %cst_47 = arith.constant 3.200000e+01 : f32
    %125 = vector.broadcast %cst_47 : f32 to vector<16x1xf32>
    %126 = arith.divf %124, %125 : vector<16x1xf32>
    %127 = vector.broadcast %126 : vector<16x1xf32> to vector<16x32xf32>
    %128 = arith.subf %118, %127 : vector<16x32xf32>
    %129 = arith.mulf %128, %128 : vector<16x32xf32>
    %cst_48 = arith.constant dense<0.000000e+00> : vector<16xf32>
    %130 = vector.multi_reduction <add>, %129, %cst_48 [1] : vector<16x32xf32> to vector<16xf32>
    %131 = vector.shape_cast %130 : vector<16xf32> to vector<16x1xf32>
    %cst_49 = arith.constant 3.200000e+01 : f32
    %132 = vector.broadcast %cst_49 : f32 to vector<16x1xf32>
    %133 = arith.divf %131, %132 : vector<16x1xf32>
    %cst_50 = arith.constant 9.99999996E-13 : f32
    %134 = vector.broadcast %cst_50 : f32 to vector<16x1xf32>
    %135 = arith.addf %133, %134 : vector<16x1xf32>
    %136 = math.rsqrt %135 : vector<16x1xf32>
    %137 = vector.broadcast %136 : vector<16x1xf32> to vector<16x32xf32>
    %138 = arith.mulf %128, %137 : vector<16x32xf32>
    %139 = vector.broadcast %120 : vector<1x32xf32> to vector<16x32xf32>
    %140 = arith.mulf %138, %139 : vector<16x32xf32>
    %141 = vector.broadcast %122 : vector<1x32xf32> to vector<16x32xf32>
    %142 = arith.addf %140, %141 : vector<16x32xf32>
    %c0_51 = arith.constant 0 : index
    %c0_52 = arith.constant 0 : index
    %c0_53 = arith.constant 0 : index
    %143 = vector.load %arg8[%c0_51, %c0_52, %c0_53] : memref<2x32x64xf32, #tpu.memory_space<vmem>>, vector<1x32x64xf32>
    %144 = vector.shape_cast %143 : vector<1x32x64xf32> to vector<32x64xf32>
    %cst_54 = arith.constant dense<0.000000e+00> : vector<16x64xf32>
    %145 = tpu.matmul %142, %144, %cst_54 {dimension_numbers = #tpu.dot_dimension_numbers<[1], [0], [0], [1], [0, 0, 1, 1], [], []>} : vector<16x32xf32>, vector<32x64xf32>, vector<16x64xf32> -> vector<16x64xf32>
    %c0_55 = arith.constant 0 : index
    %c0_56 = arith.constant 0 : index
    %c0_57 = arith.constant 0 : index
    %146 = vector.load %arg9[%c0_55, %c0_56, %c0_57] : memref<2x1x64xf32, #tpu.memory_space<vmem>>, vector<1x1x64xf32>
    %147 = vector.shape_cast %146 : vector<1x1x64xf32> to vector<1x64xf32>
    %148 = vector.broadcast %147 : vector<1x64xf32> to vector<16x64xf32>
    %149 = arith.addf %145, %148 : vector<16x64xf32>
    %cst_58 = arith.constant 5.000000e-01 : f32
    %150 = vector.broadcast %cst_58 : f32 to vector<16x64xf32>
    %151 = arith.mulf %150, %149 : vector<16x64xf32>
    %cst_59 = arith.constant 4.471500e-02 : f32
    %152 = vector.broadcast %cst_59 : f32 to vector<16x64xf32>
    %153 = arith.mulf %152, %149 : vector<16x64xf32>
    %154 = arith.mulf %153, %149 : vector<16x64xf32>
    %155 = arith.mulf %154, %149 : vector<16x64xf32>
    %156 = arith.addf %149, %155 : vector<16x64xf32>
    %cst_60 = arith.constant 0.797884583 : f32
    %157 = vector.broadcast %cst_60 : f32 to vector<16x64xf32>
    %158 = arith.mulf %157, %156 : vector<16x64xf32>
    %159 = math.tanh %158 : vector<16x64xf32>
    %cst_61 = arith.constant 1.000000e+00 : f32
    %160 = vector.broadcast %cst_61 : f32 to vector<16x64xf32>
    %161 = arith.addf %160, %159 : vector<16x64xf32>
    %162 = arith.mulf %151, %161 : vector<16x64xf32>
    %c0_62 = arith.constant 0 : index
    %c0_63 = arith.constant 0 : index
    %c0_64 = arith.constant 0 : index
    %163 = vector.load %arg10[%c0_62, %c0_63, %c0_64] : memref<2x64x32xf32, #tpu.memory_space<vmem>>, vector<1x64x32xf32>
    %164 = vector.shape_cast %163 : vector<1x64x32xf32> to vector<64x32xf32>
    %cst_65 = arith.constant dense<0.000000e+00> : vector<16x32xf32>
    %165 = tpu.matmul %162, %164, %cst_65 {dimension_numbers = #tpu.dot_dimension_numbers<[1], [0], [0], [1], [0, 0, 1, 1], [], []>} : vector<16x64xf32>, vector<64x32xf32>, vector<16x32xf32> -> vector<16x32xf32>
    %c0_66 = arith.constant 0 : index
    %c0_67 = arith.constant 0 : index
    %c0_68 = arith.constant 0 : index
    %166 = vector.load %arg11[%c0_66, %c0_67, %c0_68] : memref<2x1x32xf32, #tpu.memory_space<vmem>>, vector<1x1x32xf32>
    %167 = vector.shape_cast %166 : vector<1x1x32xf32> to vector<1x32xf32>
    %168 = vector.broadcast %167 : vector<1x32xf32> to vector<16x32xf32>
    %169 = arith.addf %165, %168 : vector<16x32xf32>
    %170 = arith.addf %169, %142 : vector<16x32xf32>
    %c0_69 = arith.constant 0 : index
    %c0_70 = arith.constant 0 : index
    %c0_71 = arith.constant 0 : index
    %171 = vector.load %arg12[%c0_69, %c0_70, %c0_71] : memref<2x1x32xf32, #tpu.memory_space<vmem>>, vector<1x1x32xf32>
    %172 = vector.shape_cast %171 : vector<1x1x32xf32> to vector<1x32xf32>
    %c0_72 = arith.constant 0 : index
    %c0_73 = arith.constant 0 : index
    %c0_74 = arith.constant 0 : index
    %173 = vector.load %arg13[%c0_72, %c0_73, %c0_74] : memref<2x1x32xf32, #tpu.memory_space<vmem>>, vector<1x1x32xf32>
    %174 = vector.shape_cast %173 : vector<1x1x32xf32> to vector<1x32xf32>
    %cst_75 = arith.constant dense<0.000000e+00> : vector<16xf32>
    %175 = vector.multi_reduction <add>, %170, %cst_75 [1] : vector<16x32xf32> to vector<16xf32>
    %176 = vector.shape_cast %175 : vector<16xf32> to vector<16x1xf32>
    %cst_76 = arith.constant 3.200000e+01 : f32
    %177 = vector.broadcast %cst_76 : f32 to vector<16x1xf32>
    %178 = arith.divf %176, %177 : vector<16x1xf32>
    %179 = vector.broadcast %178 : vector<16x1xf32> to vector<16x32xf32>
    %180 = arith.subf %170, %179 : vector<16x32xf32>
    %181 = arith.mulf %180, %180 : vector<16x32xf32>
    %cst_77 = arith.constant dense<0.000000e+00> : vector<16xf32>
    %182 = vector.multi_reduction <add>, %181, %cst_77 [1] : vector<16x32xf32> to vector<16xf32>
    %183 = vector.shape_cast %182 : vector<16xf32> to vector<16x1xf32>
    %cst_78 = arith.constant 3.200000e+01 : f32
    %184 = vector.broadcast %cst_78 : f32 to vector<16x1xf32>
    %185 = arith.divf %183, %184 : vector<16x1xf32>
    %cst_79 = arith.constant 9.99999996E-13 : f32
    %186 = vector.broadcast %cst_79 : f32 to vector<16x1xf32>
    %187 = arith.addf %185, %186 : vector<16x1xf32>
    %188 = math.rsqrt %187 : vector<16x1xf32>
    %189 = vector.broadcast %188 : vector<16x1xf32> to vector<16x32xf32>
    %190 = arith.mulf %180, %189 : vector<16x32xf32>
    %191 = vector.broadcast %172 : vector<1x32xf32> to vector<16x32xf32>
    %192 = arith.mulf %190, %191 : vector<16x32xf32>
    %193 = vector.broadcast %174 : vector<1x32xf32> to vector<16x32xf32>
    %194 = arith.addf %192, %193 : vector<16x32xf32>
    %c1 = arith.constant 1 : index
    %c0_80 = arith.constant 0 : index
    %c0_81 = arith.constant 0 : index
    %195 = vector.load %arg2[%c1, %c0_80, %c0_81] : memref<2x32x96xf32, #tpu.memory_space<vmem>>, vector<1x32x96xf32>
    %196 = vector.shape_cast %195 : vector<1x32x96xf32> to vector<32x96xf32>
    %cst_82 = arith.constant dense<0.000000e+00> : vector<16x96xf32>
    %197 = tpu.matmul %194, %196, %cst_82 {dimension_numbers = #tpu.dot_dimension_numbers<[1], [0], [0], [1], [0, 0, 1, 1], [], []>} : vector<16x32xf32>, vector<32x96xf32>, vector<16x96xf32> -> vector<16x96xf32>
    %c1_83 = arith.constant 1 : index
    %c0_84 = arith.constant 0 : index
    %c0_85 = arith.constant 0 : index
    %198 = vector.load %arg3[%c1_83, %c0_84, %c0_85] : memref<2x1x96xf32, #tpu.memory_space<vmem>>, vector<1x1x96xf32>
    %199 = vector.shape_cast %198 : vector<1x1x96xf32> to vector<1x96xf32>
    %200 = vector.broadcast %199 : vector<1x96xf32> to vector<16x96xf32>
    %201 = arith.addf %197, %200 : vector<16x96xf32>
    %c1_86 = arith.constant 1 : index
    %c0_87 = arith.constant 0 : index
    %c0_88 = arith.constant 0 : index
    %202 = vector.load %arg4[%c1_86, %c0_87, %c0_88] : memref<2x32x32xf32, #tpu.memory_space<vmem>>, vector<1x32x32xf32>
    %203 = vector.shape_cast %202 : vector<1x32x32xf32> to vector<32x32xf32>
    %c1_89 = arith.constant 1 : index
    %c0_90 = arith.constant 0 : index
    %c0_91 = arith.constant 0 : index
    %204 = vector.load %arg5[%c1_89, %c0_90, %c0_91] : memref<2x1x32xf32, #tpu.memory_space<vmem>>, vector<1x1x32xf32>
    %205 = vector.shape_cast %204 : vector<1x1x32xf32> to vector<1x32xf32>
    %206 = vector.extract_strided_slice %201 {offsets = [0, 0], sizes = [16, 8], strides = [1, 1]} : vector<16x96xf32> to vector<16x8xf32>
    %207 = vector.shape_cast %206 : vector<16x8xf32> to vector<2x8x8xf32>
    %208 = vector.extract_strided_slice %201 {offsets = [0, 32], sizes = [16, 8], strides = [1, 1]} : vector<16x96xf32> to vector<16x8xf32>
    %209 = vector.shape_cast %208 : vector<16x8xf32> to vector<2x8x8xf32>
    %210 = vector.extract_strided_slice %201 {offsets = [0, 64], sizes = [16, 8], strides = [1, 1]} : vector<16x96xf32> to vector<16x8xf32>
    %211 = vector.shape_cast %210 : vector<16x8xf32> to vector<2x8x8xf32>
    "tpu.trace_start"() <{level = 10 : i32, message = "bqd,bkd->bqk"}> : () -> ()
    %cst_92 = arith.constant dense<0.000000e+00> : vector<2x8x8xf32>
    %212 = tpu.matmul %207, %209, %cst_92 {dimension_numbers = #tpu.dot_dimension_numbers<[2], [2], [1], [1], [0, 0, 0, 1, 1, 1], [0], [0]>} : vector<2x8x8xf32>, vector<2x8x8xf32>, vector<2x8x8xf32> -> vector<2x8x8xf32>
    "tpu.trace_stop"() : () -> ()
    %cst_93 = arith.constant 0.353553385 : f32
    %213 = vector.broadcast %cst_93 : f32 to vector<2x8x8xf32>
    %214 = arith.mulf %212, %213 : vector<2x8x8xf32>
    %215 = vector.broadcast %1 : vector<2x1x8xf32> to vector<2x8x8xf32>
    %216 = arith.addf %214, %215 : vector<2x8x8xf32>
    %cst_94 = arith.constant dense<0xFF800000> : vector<2x8xf32>
    %217 = vector.multi_reduction <maximumf>, %216, %cst_94 [2] : vector<2x8x8xf32> to vector<2x8xf32>
    %218 = vector.shape_cast %217 : vector<2x8xf32> to vector<2x8x1xf32>
    %219 = vector.broadcast %218 : vector<2x8x1xf32> to vector<2x8x8xf32>
    %220 = arith.subf %216, %219 : vector<2x8x8xf32>
    %221 = math.exp %220 : vector<2x8x8xf32>
    %cst_95 = arith.constant dense<0.000000e+00> : vector<2x8xf32>
    %222 = vector.multi_reduction <add>, %221, %cst_95 [2] : vector<2x8x8xf32> to vector<2x8xf32>
    %223 = vector.shape_cast %222 : vector<2x8xf32> to vector<2x8x1xf32>
    %224 = tpu.reciprocal %223 {approx = true} : vector<2x8x1xf32> -> vector<2x8x1xf32>
    %225 = vector.broadcast %224 : vector<2x8x1xf32> to vector<2x8x8xf32>
    %226 = arith.mulf %221, %225 : vector<2x8x8xf32>
    "tpu.trace_start"() <{level = 10 : i32, message = "bqk,bkd->bqd"}> : () -> ()
    %cst_96 = arith.constant dense<0.000000e+00> : vector<2x8x8xf32>
    %227 = tpu.matmul %226, %211, %cst_96 {dimension_numbers = #tpu.dot_dimension_numbers<[2], [1], [1], [2], [0, 0, 0, 1, 1, 2], [0], [0]>} : vector<2x8x8xf32>, vector<2x8x8xf32>, vector<2x8x8xf32> -> vector<2x8x8xf32>
    "tpu.trace_stop"() : () -> ()
    %228 = vector.shape_cast %227 : vector<2x8x8xf32> to vector<16x8xf32>
    %229 = vector.extract_strided_slice %203 {offsets = [0, 0], sizes = [8, 32], strides = [1, 1]} : vector<32x32xf32> to vector<8x32xf32>
    %cst_97 = arith.constant dense<0.000000e+00> : vector<16x32xf32>
    %230 = tpu.matmul %228, %229, %cst_97 {dimension_numbers = #tpu.dot_dimension_numbers<[1], [0], [0], [1], [0, 0, 1, 1], [], []>} : vector<16x8xf32>, vector<8x32xf32>, vector<16x32xf32> -> vector<16x32xf32>
    %231 = vector.broadcast %205 : vector<1x32xf32> to vector<16x32xf32>
    %232 = arith.addf %231, %230 : vector<16x32xf32>
    %233 = vector.extract_strided_slice %201 {offsets = [0, 8], sizes = [16, 8], strides = [1, 1]} : vector<16x96xf32> to vector<16x8xf32>
    %234 = vector.shape_cast %233 : vector<16x8xf32> to vector<2x8x8xf32>
    %235 = vector.extract_strided_slice %201 {offsets = [0, 40], sizes = [16, 8], strides = [1, 1]} : vector<16x96xf32> to vector<16x8xf32>
    %236 = vector.shape_cast %235 : vector<16x8xf32> to vector<2x8x8xf32>
    %237 = vector.extract_strided_slice %201 {offsets = [0, 72], sizes = [16, 8], strides = [1, 1]} : vector<16x96xf32> to vector<16x8xf32>
    %238 = vector.shape_cast %237 : vector<16x8xf32> to vector<2x8x8xf32>
    "tpu.trace_start"() <{level = 10 : i32, message = "bqd,bkd->bqk"}> : () -> ()
    %cst_98 = arith.constant dense<0.000000e+00> : vector<2x8x8xf32>
    %239 = tpu.matmul %234, %236, %cst_98 {dimension_numbers = #tpu.dot_dimension_numbers<[2], [2], [1], [1], [0, 0, 0, 1, 1, 1], [0], [0]>} : vector<2x8x8xf32>, vector<2x8x8xf32>, vector<2x8x8xf32> -> vector<2x8x8xf32>
    "tpu.trace_stop"() : () -> ()
    %cst_99 = arith.constant 0.353553385 : f32
    %240 = vector.broadcast %cst_99 : f32 to vector<2x8x8xf32>
    %241 = arith.mulf %239, %240 : vector<2x8x8xf32>
    %242 = vector.broadcast %1 : vector<2x1x8xf32> to vector<2x8x8xf32>
    %243 = arith.addf %241, %242 : vector<2x8x8xf32>
    %cst_100 = arith.constant dense<0xFF800000> : vector<2x8xf32>
    %244 = vector.multi_reduction <maximumf>, %243, %cst_100 [2] : vector<2x8x8xf32> to vector<2x8xf32>
    %245 = vector.shape_cast %244 : vector<2x8xf32> to vector<2x8x1xf32>
    %246 = vector.broadcast %245 : vector<2x8x1xf32> to vector<2x8x8xf32>
    %247 = arith.subf %243, %246 : vector<2x8x8xf32>
    %248 = math.exp %247 : vector<2x8x8xf32>
    %cst_101 = arith.constant dense<0.000000e+00> : vector<2x8xf32>
    %249 = vector.multi_reduction <add>, %248, %cst_101 [2] : vector<2x8x8xf32> to vector<2x8xf32>
    %250 = vector.shape_cast %249 : vector<2x8xf32> to vector<2x8x1xf32>
    %251 = tpu.reciprocal %250 {approx = true} : vector<2x8x1xf32> -> vector<2x8x1xf32>
    %252 = vector.broadcast %251 : vector<2x8x1xf32> to vector<2x8x8xf32>
    %253 = arith.mulf %248, %252 : vector<2x8x8xf32>
    "tpu.trace_start"() <{level = 10 : i32, message = "bqk,bkd->bqd"}> : () -> ()
    %cst_102 = arith.constant dense<0.000000e+00> : vector<2x8x8xf32>
    %254 = tpu.matmul %253, %238, %cst_102 {dimension_numbers = #tpu.dot_dimension_numbers<[2], [1], [1], [2], [0, 0, 0, 1, 1, 2], [0], [0]>} : vector<2x8x8xf32>, vector<2x8x8xf32>, vector<2x8x8xf32> -> vector<2x8x8xf32>
    "tpu.trace_stop"() : () -> ()
    %255 = vector.shape_cast %254 : vector<2x8x8xf32> to vector<16x8xf32>
    %256 = vector.extract_strided_slice %203 {offsets = [8, 0], sizes = [8, 32], strides = [1, 1]} : vector<32x32xf32> to vector<8x32xf32>
    %cst_103 = arith.constant dense<0.000000e+00> : vector<16x32xf32>
    %257 = tpu.matmul %255, %256, %cst_103 {dimension_numbers = #tpu.dot_dimension_numbers<[1], [0], [0], [1], [0, 0, 1, 1], [], []>} : vector<16x8xf32>, vector<8x32xf32>, vector<16x32xf32> -> vector<16x32xf32>
    %258 = arith.addf %232, %257 : vector<16x32xf32>
    %259 = vector.extract_strided_slice %201 {offsets = [0, 16], sizes = [16, 8], strides = [1, 1]} : vector<16x96xf32> to vector<16x8xf32>
    %260 = vector.shape_cast %259 : vector<16x8xf32> to vector<2x8x8xf32>
    %261 = vector.extract_strided_slice %201 {offsets = [0, 48], sizes = [16, 8], strides = [1, 1]} : vector<16x96xf32> to vector<16x8xf32>
    %262 = vector.shape_cast %261 : vector<16x8xf32> to vector<2x8x8xf32>
    %263 = vector.extract_strided_slice %201 {offsets = [0, 80], sizes = [16, 8], strides = [1, 1]} : vector<16x96xf32> to vector<16x8xf32>
    %264 = vector.shape_cast %263 : vector<16x8xf32> to vector<2x8x8xf32>
    "tpu.trace_start"() <{level = 10 : i32, message = "bqd,bkd->bqk"}> : () -> ()
    %cst_104 = arith.constant dense<0.000000e+00> : vector<2x8x8xf32>
    %265 = tpu.matmul %260, %262, %cst_104 {dimension_numbers = #tpu.dot_dimension_numbers<[2], [2], [1], [1], [0, 0, 0, 1, 1, 1], [0], [0]>} : vector<2x8x8xf32>, vector<2x8x8xf32>, vector<2x8x8xf32> -> vector<2x8x8xf32>
    "tpu.trace_stop"() : () -> ()
    %cst_105 = arith.constant 0.353553385 : f32
    %266 = vector.broadcast %cst_105 : f32 to vector<2x8x8xf32>
    %267 = arith.mulf %265, %266 : vector<2x8x8xf32>
    %268 = vector.broadcast %1 : vector<2x1x8xf32> to vector<2x8x8xf32>
    %269 = arith.addf %267, %268 : vector<2x8x8xf32>
    %cst_106 = arith.constant dense<0xFF800000> : vector<2x8xf32>
    %270 = vector.multi_reduction <maximumf>, %269, %cst_106 [2] : vector<2x8x8xf32> to vector<2x8xf32>
    %271 = vector.shape_cast %270 : vector<2x8xf32> to vector<2x8x1xf32>
    %272 = vector.broadcast %271 : vector<2x8x1xf32> to vector<2x8x8xf32>
    %273 = arith.subf %269, %272 : vector<2x8x8xf32>
    %274 = math.exp %273 : vector<2x8x8xf32>
    %cst_107 = arith.constant dense<0.000000e+00> : vector<2x8xf32>
    %275 = vector.multi_reduction <add>, %274, %cst_107 [2] : vector<2x8x8xf32> to vector<2x8xf32>
    %276 = vector.shape_cast %275 : vector<2x8xf32> to vector<2x8x1xf32>
    %277 = tpu.reciprocal %276 {approx = true} : vector<2x8x1xf32> -> vector<2x8x1xf32>
    %278 = vector.broadcast %277 : vector<2x8x1xf32> to vector<2x8x8xf32>
    %279 = arith.mulf %274, %278 : vector<2x8x8xf32>
    "tpu.trace_start"() <{level = 10 : i32, message = "bqk,bkd->bqd"}> : () -> ()
    %cst_108 = arith.constant dense<0.000000e+00> : vector<2x8x8xf32>
    %280 = tpu.matmul %279, %264, %cst_108 {dimension_numbers = #tpu.dot_dimension_numbers<[2], [1], [1], [2], [0, 0, 0, 1, 1, 2], [0], [0]>} : vector<2x8x8xf32>, vector<2x8x8xf32>, vector<2x8x8xf32> -> vector<2x8x8xf32>
    "tpu.trace_stop"() : () -> ()
    %281 = vector.shape_cast %280 : vector<2x8x8xf32> to vector<16x8xf32>
    %282 = vector.extract_strided_slice %203 {offsets = [16, 0], sizes = [8, 32], strides = [1, 1]} : vector<32x32xf32> to vector<8x32xf32>
    %cst_109 = arith.constant dense<0.000000e+00> : vector<16x32xf32>
    %283 = tpu.matmul %281, %282, %cst_109 {dimension_numbers = #tpu.dot_dimension_numbers<[1], [0], [0], [1], [0, 0, 1, 1], [], []>} : vector<16x8xf32>, vector<8x32xf32>, vector<16x32xf32> -> vector<16x32xf32>
    %284 = arith.addf %258, %283 : vector<16x32xf32>
    %285 = vector.extract_strided_slice %201 {offsets = [0, 24], sizes = [16, 8], strides = [1, 1]} : vector<16x96xf32> to vector<16x8xf32>
    %286 = vector.shape_cast %285 : vector<16x8xf32> to vector<2x8x8xf32>
    %287 = vector.extract_strided_slice %201 {offsets = [0, 56], sizes = [16, 8], strides = [1, 1]} : vector<16x96xf32> to vector<16x8xf32>
    %288 = vector.shape_cast %287 : vector<16x8xf32> to vector<2x8x8xf32>
    %289 = vector.extract_strided_slice %201 {offsets = [0, 88], sizes = [16, 8], strides = [1, 1]} : vector<16x96xf32> to vector<16x8xf32>
    %290 = vector.shape_cast %289 : vector<16x8xf32> to vector<2x8x8xf32>
    "tpu.trace_start"() <{level = 10 : i32, message = "bqd,bkd->bqk"}> : () -> ()
    %cst_110 = arith.constant dense<0.000000e+00> : vector<2x8x8xf32>
    %291 = tpu.matmul %286, %288, %cst_110 {dimension_numbers = #tpu.dot_dimension_numbers<[2], [2], [1], [1], [0, 0, 0, 1, 1, 1], [0], [0]>} : vector<2x8x8xf32>, vector<2x8x8xf32>, vector<2x8x8xf32> -> vector<2x8x8xf32>
    "tpu.trace_stop"() : () -> ()
    %cst_111 = arith.constant 0.353553385 : f32
    %292 = vector.broadcast %cst_111 : f32 to vector<2x8x8xf32>
    %293 = arith.mulf %291, %292 : vector<2x8x8xf32>
    %294 = vector.broadcast %1 : vector<2x1x8xf32> to vector<2x8x8xf32>
    %295 = arith.addf %293, %294 : vector<2x8x8xf32>
    %cst_112 = arith.constant dense<0xFF800000> : vector<2x8xf32>
    %296 = vector.multi_reduction <maximumf>, %295, %cst_112 [2] : vector<2x8x8xf32> to vector<2x8xf32>
    %297 = vector.shape_cast %296 : vector<2x8xf32> to vector<2x8x1xf32>
    %298 = vector.broadcast %297 : vector<2x8x1xf32> to vector<2x8x8xf32>
    %299 = arith.subf %295, %298 : vector<2x8x8xf32>
    %300 = math.exp %299 : vector<2x8x8xf32>
    %cst_113 = arith.constant dense<0.000000e+00> : vector<2x8xf32>
    %301 = vector.multi_reduction <add>, %300, %cst_113 [2] : vector<2x8x8xf32> to vector<2x8xf32>
    %302 = vector.shape_cast %301 : vector<2x8xf32> to vector<2x8x1xf32>
    %303 = tpu.reciprocal %302 {approx = true} : vector<2x8x1xf32> -> vector<2x8x1xf32>
    %304 = vector.broadcast %303 : vector<2x8x1xf32> to vector<2x8x8xf32>
    %305 = arith.mulf %300, %304 : vector<2x8x8xf32>
    "tpu.trace_start"() <{level = 10 : i32, message = "bqk,bkd->bqd"}> : () -> ()
    %cst_114 = arith.constant dense<0.000000e+00> : vector<2x8x8xf32>
    %306 = tpu.matmul %305, %290, %cst_114 {dimension_numbers = #tpu.dot_dimension_numbers<[2], [1], [1], [2], [0, 0, 0, 1, 1, 2], [0], [0]>} : vector<2x8x8xf32>, vector<2x8x8xf32>, vector<2x8x8xf32> -> vector<2x8x8xf32>
    "tpu.trace_stop"() : () -> ()
    %307 = vector.shape_cast %306 : vector<2x8x8xf32> to vector<16x8xf32>
    %308 = vector.extract_strided_slice %203 {offsets = [24, 0], sizes = [8, 32], strides = [1, 1]} : vector<32x32xf32> to vector<8x32xf32>
    %cst_115 = arith.constant dense<0.000000e+00> : vector<16x32xf32>
    %309 = tpu.matmul %307, %308, %cst_115 {dimension_numbers = #tpu.dot_dimension_numbers<[1], [0], [0], [1], [0, 0, 1, 1], [], []>} : vector<16x8xf32>, vector<8x32xf32>, vector<16x32xf32> -> vector<16x32xf32>
    %310 = arith.addf %284, %309 : vector<16x32xf32>
    %311 = arith.addf %310, %194 : vector<16x32xf32>
    %c1_116 = arith.constant 1 : index
    %c0_117 = arith.constant 0 : index
    %c0_118 = arith.constant 0 : index
    %312 = vector.load %arg6[%c1_116, %c0_117, %c0_118] : memref<2x1x32xf32, #tpu.memory_space<vmem>>, vector<1x1x32xf32>
    %313 = vector.shape_cast %312 : vector<1x1x32xf32> to vector<1x32xf32>
    %c1_119 = arith.constant 1 : index
    %c0_120 = arith.constant 0 : index
    %c0_121 = arith.constant 0 : index
    %314 = vector.load %arg7[%c1_119, %c0_120, %c0_121] : memref<2x1x32xf32, #tpu.memory_space<vmem>>, vector<1x1x32xf32>
    %315 = vector.shape_cast %314 : vector<1x1x32xf32> to vector<1x32xf32>
    %cst_122 = arith.constant dense<0.000000e+00> : vector<16xf32>
    %316 = vector.multi_reduction <add>, %311, %cst_122 [1] : vector<16x32xf32> to vector<16xf32>
    %317 = vector.shape_cast %316 : vector<16xf32> to vector<16x1xf32>
    %cst_123 = arith.constant 3.200000e+01 : f32
    %318 = vector.broadcast %cst_123 : f32 to vector<16x1xf32>
    %319 = arith.divf %317, %318 : vector<16x1xf32>
    %320 = vector.broadcast %319 : vector<16x1xf32> to vector<16x32xf32>
    %321 = arith.subf %311, %320 : vector<16x32xf32>
    %322 = arith.mulf %321, %321 : vector<16x32xf32>
    %cst_124 = arith.constant dense<0.000000e+00> : vector<16xf32>
    %323 = vector.multi_reduction <add>, %322, %cst_124 [1] : vector<16x32xf32> to vector<16xf32>
    %324 = vector.shape_cast %323 : vector<16xf32> to vector<16x1xf32>
    %cst_125 = arith.constant 3.200000e+01 : f32
    %325 = vector.broadcast %cst_125 : f32 to vector<16x1xf32>
    %326 = arith.divf %324, %325 : vector<16x1xf32>
    %cst_126 = arith.constant 9.99999996E-13 : f32
    %327 = vector.broadcast %cst_126 : f32 to vector<16x1xf32>
    %328 = arith.addf %326, %327 : vector<16x1xf32>
    %329 = math.rsqrt %328 : vector<16x1xf32>
    %330 = vector.broadcast %329 : vector<16x1xf32> to vector<16x32xf32>
    %331 = arith.mulf %321, %330 : vector<16x32xf32>
    %332 = vector.broadcast %313 : vector<1x32xf32> to vector<16x32xf32>
    %333 = arith.mulf %331, %332 : vector<16x32xf32>
    %334 = vector.broadcast %315 : vector<1x32xf32> to vector<16x32xf32>
    %335 = arith.addf %333, %334 : vector<16x32xf32>
    %c1_127 = arith.constant 1 : index
    %c0_128 = arith.constant 0 : index
    %c0_129 = arith.constant 0 : index
    %336 = vector.load %arg8[%c1_127, %c0_128, %c0_129] : memref<2x32x64xf32, #tpu.memory_space<vmem>>, vector<1x32x64xf32>
    %337 = vector.shape_cast %336 : vector<1x32x64xf32> to vector<32x64xf32>
    %cst_130 = arith.constant dense<0.000000e+00> : vector<16x64xf32>
    %338 = tpu.matmul %335, %337, %cst_130 {dimension_numbers = #tpu.dot_dimension_numbers<[1], [0], [0], [1], [0, 0, 1, 1], [], []>} : vector<16x32xf32>, vector<32x64xf32>, vector<16x64xf32> -> vector<16x64xf32>
    %c1_131 = arith.constant 1 : index
    %c0_132 = arith.constant 0 : index
    %c0_133 = arith.constant 0 : index
    %339 = vector.load %arg9[%c1_131, %c0_132, %c0_133] : memref<2x1x64xf32, #tpu.memory_space<vmem>>, vector<1x1x64xf32>
    %340 = vector.shape_cast %339 : vector<1x1x64xf32> to vector<1x64xf32>
    %341 = vector.broadcast %340 : vector<1x64xf32> to vector<16x64xf32>
    %342 = arith.addf %338, %341 : vector<16x64xf32>
    %cst_134 = arith.constant 5.000000e-01 : f32
    %343 = vector.broadcast %cst_134 : f32 to vector<16x64xf32>
    %344 = arith.mulf %343, %342 : vector<16x64xf32>
    %cst_135 = arith.constant 4.471500e-02 : f32
    %345 = vector.broadcast %cst_135 : f32 to vector<16x64xf32>
    %346 = arith.mulf %345, %342 : vector<16x64xf32>
    %347 = arith.mulf %346, %342 : vector<16x64xf32>
    %348 = arith.mulf %347, %342 : vector<16x64xf32>
    %349 = arith.addf %342, %348 : vector<16x64xf32>
    %cst_136 = arith.constant 0.797884583 : f32
    %350 = vector.broadcast %cst_136 : f32 to vector<16x64xf32>
    %351 = arith.mulf %350, %349 : vector<16x64xf32>
    %352 = math.tanh %351 : vector<16x64xf32>
    %cst_137 = arith.constant 1.000000e+00 : f32
    %353 = vector.broadcast %cst_137 : f32 to vector<16x64xf32>
    %354 = arith.addf %353, %352 : vector<16x64xf32>
    %355 = arith.mulf %344, %354 : vector<16x64xf32>
    %c1_138 = arith.constant 1 : index
    %c0_139 = arith.constant 0 : index
    %c0_140 = arith.constant 0 : index
    %356 = vector.load %arg10[%c1_138, %c0_139, %c0_140] : memref<2x64x32xf32, #tpu.memory_space<vmem>>, vector<1x64x32xf32>
    %357 = vector.shape_cast %356 : vector<1x64x32xf32> to vector<64x32xf32>
    %cst_141 = arith.constant dense<0.000000e+00> : vector<16x32xf32>
    %358 = tpu.matmul %355, %357, %cst_141 {dimension_numbers = #tpu.dot_dimension_numbers<[1], [0], [0], [1], [0, 0, 1, 1], [], []>} : vector<16x64xf32>, vector<64x32xf32>, vector<16x32xf32> -> vector<16x32xf32>
    %c1_142 = arith.constant 1 : index
    %c0_143 = arith.constant 0 : index
    %c0_144 = arith.constant 0 : index
    %359 = vector.load %arg11[%c1_142, %c0_143, %c0_144] : memref<2x1x32xf32, #tpu.memory_space<vmem>>, vector<1x1x32xf32>
    %360 = vector.shape_cast %359 : vector<1x1x32xf32> to vector<1x32xf32>
    %361 = vector.broadcast %360 : vector<1x32xf32> to vector<16x32xf32>
    %362 = arith.addf %358, %361 : vector<16x32xf32>
    %363 = arith.addf %362, %335 : vector<16x32xf32>
    %c1_145 = arith.constant 1 : index
    %c0_146 = arith.constant 0 : index
    %c0_147 = arith.constant 0 : index
    %364 = vector.load %arg12[%c1_145, %c0_146, %c0_147] : memref<2x1x32xf32, #tpu.memory_space<vmem>>, vector<1x1x32xf32>
    %365 = vector.shape_cast %364 : vector<1x1x32xf32> to vector<1x32xf32>
    %c1_148 = arith.constant 1 : index
    %c0_149 = arith.constant 0 : index
    %c0_150 = arith.constant 0 : index
    %366 = vector.load %arg13[%c1_148, %c0_149, %c0_150] : memref<2x1x32xf32, #tpu.memory_space<vmem>>, vector<1x1x32xf32>
    %367 = vector.shape_cast %366 : vector<1x1x32xf32> to vector<1x32xf32>
    %cst_151 = arith.constant dense<0.000000e+00> : vector<16xf32>
    %368 = vector.multi_reduction <add>, %363, %cst_151 [1] : vector<16x32xf32> to vector<16xf32>
    %369 = vector.shape_cast %368 : vector<16xf32> to vector<16x1xf32>
    %cst_152 = arith.constant 3.200000e+01 : f32
    %370 = vector.broadcast %cst_152 : f32 to vector<16x1xf32>
    %371 = arith.divf %369, %370 : vector<16x1xf32>
    %372 = vector.broadcast %371 : vector<16x1xf32> to vector<16x32xf32>
    %373 = arith.subf %363, %372 : vector<16x32xf32>
    %374 = arith.mulf %373, %373 : vector<16x32xf32>
    %cst_153 = arith.constant dense<0.000000e+00> : vector<16xf32>
    %375 = vector.multi_reduction <add>, %374, %cst_153 [1] : vector<16x32xf32> to vector<16xf32>
    %376 = vector.shape_cast %375 : vector<16xf32> to vector<16x1xf32>
    %cst_154 = arith.constant 3.200000e+01 : f32
    %377 = vector.broadcast %cst_154 : f32 to vector<16x1xf32>
    %378 = arith.divf %376, %377 : vector<16x1xf32>
    %cst_155 = arith.constant 9.99999996E-13 : f32
    %379 = vector.broadcast %cst_155 : f32 to vector<16x1xf32>
    %380 = arith.addf %378, %379 : vector<16x1xf32>
    %381 = math.rsqrt %380 : vector<16x1xf32>
    %382 = vector.broadcast %381 : vector<16x1xf32> to vector<16x32xf32>
    %383 = arith.mulf %373, %382 : vector<16x32xf32>
    %384 = vector.broadcast %365 : vector<1x32xf32> to vector<16x32xf32>
    %385 = arith.mulf %383, %384 : vector<16x32xf32>
    %386 = vector.broadcast %367 : vector<1x32xf32> to vector<16x32xf32>
    %387 = arith.addf %385, %386 : vector<16x32xf32>
    %c0_156 = arith.constant 0 : index
    %c0_157 = arith.constant 0 : index
    %388 = vector.load %arg14[%c0_156, %c0_157] : memref<16x32xf32, #tpu.memory_space<vmem>>, vector<16x32xf32>
    tpu.vector_store %arg14[%c0_156, %c0_157], %387 {strides = array<i32>} : memref<16x32xf32, #tpu.memory_space<vmem>>, vector<16x32xf32>,
    return
  }
}

</mosaic_0001>

<bundles_post_ra>
// kernel: roberta_encoder.1
= control target key start
LH: loop header
LB: loop body
LE: loop exit
PB: predicated region body
PF: predicated region fallthrough
CT: control target
= control target key end

     0   :  { %19 = vsyncpa [#allocation3], 0  ;;  %s6182_s0 = inlined_call_operand.hbm [shape: f32[16,32], index: 0, kind: input, shape index: {}]   ;;  %s6183_s1 = inlined_call_operand.hbm [shape: f32[2,1,8], index: 1, kind: input, shape index: {}]   ;;  %s6184_s2 = inlined_call_operand.hbm [shape: f32[2,32,96], index: 2, kind: input, shape index: {}]   ;;  %s6185_s3 = inlined_call_operand.hbm [shape: f32[2,1,96], index: 3, kind: input, shape index: {}]   ;;  %s6186_s4 = inlined_call_operand.hbm [shape: f32[2,32,32], index: 4, kind: input, shape index: {}]   ;;  %s6187_s5 = inlined_call_operand.hbm [shape: f32[2,1,32], index: 5, kind: input, shape index: {}]   ;;  %s6188_s6 = inlined_call_operand.hbm [shape: f32[2,1,32], index: 6, kind: input, shape index: {}]   ;;  %s6189_s7 = inlined_call_operand.hbm [shape: f32[2,1,32], index: 7, kind: input, shape index: {}]   ;;  %s6190_s8 = inlined_call_operand.hbm [shape: f32[2,32,64], index: 8, kind: input, shape index: {}]   ;;  %s6191_s9 = inlined_call_operand.hbm [shape: f32[2,1,64], index: 9, kind: input, shape index: {}]   ;;  %s6192_s10 = inlined_call_operand.hbm [shape: f32[2,64,32], index: 10, kind: input, shape index: {}]   ;;  %s6193_s11 = inlined_call_operand.hbm [shape: f32[2,1,32], index: 11, kind: input, shape index: {}]   ;;  %s6194_s12 = inlined_call_operand.hbm [shape: f32[2,1,32], index: 12, kind: input, shape index: {}]   ;;  %s6195_s13 = inlined_call_operand.hbm [shape: f32[2,1,32], index: 13, kind: input, shape index: {}]   ;;  %s6196_s14 = inlined_call_operand.hbm [shape: f32[16,32], index: 14, kind: output, shape index: {}]  }
   0x1   :  { %20 = vsyncpa [#allocation6], 0 }
   0x2   :  { %21 = vsyncpa [#allocation9], 0 }
   0x3   :  { %22 = vsyncpa [#allocation12], 0 }
   0x4   :  { %23 = vsyncpa [#allocation15], 0 }
   0x5   :  { %24 = vsyncpa [#allocation18], 0 }
   0x6   :  { %25 = vsyncpa [#allocation21], 0 }
   0x7   :  { %26 = vsyncpa [#allocation24], 0 }
   0x8   :  { %27 = vsyncpa [#allocation4], 0  ;;  %s5488_s29 = smov [#allocation5]   ;;  %s5140_s17 = scalar_lea.hbm %s6183_s1, 32 }
   0x9   :  { %s45_s30 = sshll.u32 %s5488_s29, 4  ;;  %p5141_p0 = scmp.ne.s32.totalorder %s6183_s1, %s5140_s17  ;;  %s46_s30 = int_to_ptr.vmem [resolvable:$true] %s45_s30 }
   0xa   :  { %p5144_p1 = scmp.lt.u32.totalorder %s5140_s17, %s6183_s1 }
   0xc   :  { %p5146_p2 = pnand %p5144_p1, %p5141_p0 }
   0xe   :  { %5149 = shalt.err (!%p5146_p2)
}
   0xf   :  { %s5150_s22 = scalar_lea.vmem %s46_s30, 32  ;;  %p5155_p4 = scmp.lt.s32.totalorder %s46_s30, %s46_s30 }
  0x10   :  { %p5151_p3 = scmp.ne.s32.totalorder %s46_s30, %s5150_s22  ;;  %p5156_p5 = scmp.lt.s32.totalorder %s5150_s22, %s5150_s22 }
  0x12   :  { %p5157_p6 = por %p5156_p5, %p5155_p4 }
  0x14   :  { %p5158_p7 = pnand %p5157_p6, %p5151_p3 }
  0x16   :  { %5161 = shalt.err (!%p5158_p7)
}
  0x17   :  { %s5489_s23 = smov 16   ;;  %s5490_s24 = smov 1  }
  0x18   :  { %51 = dma.hbm_to_vmem [thread:$0]  %s6183_s1, 32, %s46_s30, [#allocation6], %s5489_s23, %s5489_s23, %s5490_s24  }
  0x19   :  { %s5491_s27 = smov [#allocation8]   ;;  %s5492_s29 = smov [#allocation11]  }
  0x1a   :  { %s69_s28 = sshll.u32 %s5491_s27, 4  ;;  %s93_s15 = sshll.u32 %s5492_s29, 4  ;;  %s70_s28 = int_to_ptr.vmem [resolvable:$true] %s69_s28  ;;  %s94_s15 = int_to_ptr.vmem [resolvable:$true] %s93_s15 }
  0x1b   :  { %s5162_s18 = scalar_lea.hbm %s6185_s3, 32 }
  0x1c   :  { %p5163_p8 = scmp.ne.s32.totalorder %s6185_s3, %s5162_s18  ;;  %p5166_p9 = scmp.lt.u32.totalorder %s5162_s18, %s6185_s3 }
  0x1e   :  { %p5168_p10 = pnand %p5166_p9, %p5163_p8 }
  0x20   :  { %5171 = shalt.err (!%p5168_p10)
}
  0x21   :  { %s5172_s1 = scalar_lea.vmem %s70_s28, 32  ;;  %p5177_p12 = scmp.lt.s32.totalorder %s70_s28, %s70_s28 }
  0x22   :  { %p5173_p11 = scmp.ne.s32.totalorder %s70_s28, %s5172_s1  ;;  %p5178_p13 = scmp.lt.s32.totalorder %s5172_s1, %s5172_s1 }
  0x24   :  { %p5179_p0 = por %p5178_p13, %p5177_p12 }
  0x26   :  { %p5180_p1 = pnand %p5179_p0, %p5173_p11 }
  0x28   :  { %5183 = shalt.err (!%p5180_p1)
}
  0x29   :  { %75 = dma.hbm_to_vmem [thread:$0]  %s6185_s3, 32, %s70_s28, [#allocation9], %s5489_s23, %s5489_s23, %s5490_s24  }
  0x2a   :  { %s5184_s29 = scalar_lea.hbm %s6187_s5, 32 }
  0x2b   :  { %p5185_p2 = scmp.ne.s32.totalorder %s6187_s5, %s5184_s29  ;;  %p5188_p3 = scmp.lt.u32.totalorder %s5184_s29, %s6187_s5 }
  0x2d   :  { %p5190_p4 = pnand %p5188_p3, %p5185_p2 }
  0x2f   :  { %5193 = shalt.err (!%p5190_p4)
}
  0x30   :  { %s5194_s20 = scalar_lea.vmem %s94_s15, 32  ;;  %p5199_p6 = scmp.lt.s32.totalorder %s94_s15, %s94_s15 }
  0x31   :  { %p5195_p5 = scmp.ne.s32.totalorder %s94_s15, %s5194_s20  ;;  %p5200_p7 = scmp.lt.s32.totalorder %s5194_s20, %s5194_s20 }
  0x33   :  { %p5201_p8 = por %p5200_p7, %p5199_p6 }
  0x35   :  { %p5202_p9 = pnand %p5201_p8, %p5195_p5 }
  0x37   :  { %5205 = shalt.err (!%p5202_p9)
}
  0x38   :  { %99 = dma.hbm_to_vmem [thread:$0]  %s6187_s5, 32, %s94_s15, [#allocation12], %s5489_s23, %s5489_s23, %s5490_s24  }
  0x39   :  { %s5493_s21 = smov [#allocation14]   ;;  %s5494_s1 = smov [#allocation17]  }
  0x3a   :  { %s117_s22 = sshll.u32 %s5493_s21, 4  ;;  %s141_s30 = sshll.u32 %s5494_s1, 4  ;;  %s118_s22 = int_to_ptr.vmem [resolvable:$true] %s117_s22  ;;  %s142_s30 = int_to_ptr.vmem [resolvable:$true] %s141_s30 }
  0x3b   :  { %s5206_s27 = scalar_lea.hbm %s6189_s7, 32 }
  0x3c   :  { %p5207_p10 = scmp.ne.s32.totalorder %s6189_s7, %s5206_s27  ;;  %p5210_p11 = scmp.lt.u32.totalorder %s5206_s27, %s6189_s7 }
  0x3e   :  { %p5212_p12 = pnand %p5210_p11, %p5207_p10 }
  0x40   :  { %5215 = shalt.err (!%p5212_p12)
}
  0x41   :  { %s5216_s5 = scalar_lea.vmem %s118_s22, 32  ;;  %p5221_p0 = scmp.lt.s32.totalorder %s118_s22, %s118_s22 }
  0x42   :  { %p5217_p13 = scmp.ne.s32.totalorder %s118_s22, %s5216_s5  ;;  %p5222_p1 = scmp.lt.s32.totalorder %s5216_s5, %s5216_s5 }
  0x44   :  { %p5223_p2 = por %p5222_p1, %p5221_p0 }
  0x46   :  { %p5224_p3 = pnand %p5223_p2, %p5217_p13 }
  0x48   :  { %5227 = shalt.err (!%p5224_p3)
}
  0x49   :  { %123 = dma.hbm_to_vmem [thread:$0]  %s6189_s7, 32, %s118_s22, [#allocation15], %s5489_s23, %s5489_s23, %s5490_s24  }
  0x4a   :  { %s5228_s28 = scalar_lea.hbm %s6191_s9, 32 }
  0x4b   :  { %p5229_p4 = scmp.ne.s32.totalorder %s6191_s9, %s5228_s28  ;;  %p5232_p5 = scmp.lt.u32.totalorder %s5228_s28, %s6191_s9 }
  0x4d   :  { %p5234_p6 = pnand %p5232_p5, %p5229_p4 }
  0x4f   :  { %5237 = shalt.err (!%p5234_p6)
}
  0x50   :  { %s5238_s27 = scalar_lea.vmem %s142_s30, 32  ;;  %p5243_p8 = scmp.lt.s32.totalorder %s142_s30, %s142_s30 }
  0x51   :  { %p5239_p7 = scmp.ne.s32.totalorder %s142_s30, %s5238_s27  ;;  %p5244_p9 = scmp.lt.s32.totalorder %s5238_s27, %s5238_s27 }
  0x53   :  { %p5245_p10 = por %p5244_p9, %p5243_p8 }
  0x55   :  { %p5246_p11 = pnand %p5245_p10, %p5239_p7 }
  0x57   :  { %5249 = shalt.err (!%p5246_p11)
}
  0x58   :  { %147 = dma.hbm_to_vmem [thread:$0]  %s6191_s9, 32, %s142_s30, [#allocation18], %s5489_s23, %s5489_s23, %s5490_s24  }
  0x59   :  { %s5495_s29 = smov [#allocation20]   ;;  %s5496_s17 = smov [#allocation2]  }
  0x5a   :  { %s165_s16 = sshll.u32 %s5495_s29, 4  ;;  %s33_s18 = sshll.u32 %s5496_s17, 4  ;;  %s166_s16 = int_to_ptr.vmem [resolvable:$true] %s165_s16  ;;  %s34_s18 = int_to_ptr.vmem [resolvable:$true] %s33_s18 }
  0x5b   :  { %s5250_s19 = scalar_lea.hbm %s6193_s11, 32 }
  0x5c   :  { %p5251_p12 = scmp.ne.s32.totalorder %s6193_s11, %s5250_s19  ;;  %p5254_p13 = scmp.lt.u32.totalorder %s5250_s19, %s6193_s11 }
  0x5e   :  { %p5256_p0 = pnand %p5254_p13, %p5251_p12 }
  0x60   :  { %5259 = shalt.err (!%p5256_p0)
}
  0x61   :  { %s5260_s9 = scalar_lea.vmem %s166_s16, 32  ;;  %p5265_p2 = scmp.lt.s32.totalorder %s166_s16, %s166_s16 }
  0x62   :  { %p5261_p1 = scmp.ne.s32.totalorder %s166_s16, %s5260_s9  ;;  %p5266_p3 = scmp.lt.s32.totalorder %s5260_s9, %s5260_s9 }
  0x64   :  { %p5267_p4 = por %p5266_p3, %p5265_p2 }
  0x66   :  { %p5268_p5 = pnand %p5267_p4, %p5261_p1 }
  0x68   :  { %5271 = shalt.err (!%p5268_p5)
}
  0x69   :  { %171 = dma.hbm_to_vmem [thread:$0]  %s6193_s11, 32, %s166_s16, [#allocation21], %s5489_s23, %s5489_s23, %s5490_s24  }
  0x6a   :  { %s5272_s27 = scalar_lea.hbm %s6182_s0, 256 }
  0x6b   :  { %p5273_p6 = scmp.ne.s32.totalorder %s6182_s0, %s5272_s27  ;;  %p5276_p7 = scmp.lt.u32.totalorder %s5272_s27, %s6182_s0 }
  0x6d   :  { %p5278_p8 = pnand %p5276_p7, %p5273_p6 }
  0x6f   :  { %5281 = shalt.err (!%p5278_p8)
}
  0x70   :  { %s5282_s5 = scalar_lea.vmem %s34_s18, 256  ;;  %p5287_p10 = scmp.lt.s32.totalorder %s34_s18, %s34_s18 }
  0x71   :  { %p5283_p9 = scmp.ne.s32.totalorder %s34_s18, %s5282_s5  ;;  %p5288_p11 = scmp.lt.s32.totalorder %s5282_s5, %s5282_s5 }
  0x73   :  { %p5289_p12 = por %p5288_p11, %p5287_p10 }
  0x75   :  { %p5290_p13 = pnand %p5289_p12, %p5283_p9 }
  0x77   :  { %5293 = shalt.err (!%p5290_p13)
}
  0x78   :  { %s5497_s11 = smov 128   ;;  %s5498_s16 = smov 8  }
  0x79   :  { %39 = dma.hbm_to_vmem [thread:$0]  %s6182_s0, 256, %s34_s18, [#allocation3], %s5497_s11, %s5497_s11, %s5498_s16  }
  0x7a   :  { %s5499_s20 = smov [#allocation7]   ;;  %s5500_s28 = smov [#allocation10]  }
  0x7b   :  { %s57_s3 = sshll.u32 %s5499_s20, 4  ;;  %s81_s21 = sshll.u32 %s5500_s28, 4  ;;  %s58_s3 = int_to_ptr.vmem [resolvable:$true] %s57_s3  ;;  %s82_s21 = int_to_ptr.vmem [resolvable:$true] %s81_s21 }
  0x7c   :  { %s5294_s1 = scalar_lea.hbm %s6184_s2, 1024 }
  0x7d   :  { %p5295_p0 = scmp.ne.s32.totalorder %s6184_s2, %s5294_s1  ;;  %p5298_p1 = scmp.lt.u32.totalorder %s5294_s1, %s6184_s2 }
  0x7f   :  { %p5300_p2 = pnand %p5298_p1, %p5295_p0 }
  0x81   :  { %5303 = shalt.err (!%p5300_p2)
}
  0x82   :  { %s5304_s0 = scalar_lea.vmem %s58_s3, 1024  ;;  %p5309_p4 = scmp.lt.s32.totalorder %s58_s3, %s58_s3 }
  0x83   :  { %p5305_p3 = scmp.ne.s32.totalorder %s58_s3, %s5304_s0  ;;  %p5310_p5 = scmp.lt.s32.totalorder %s5304_s0, %s5304_s0 }
  0x85   :  { %p5311_p6 = por %p5310_p5, %p5309_p4 }
  0x87   :  { %p5312_p7 = pnand %p5311_p6, %p5305_p3 }
  0x89   :  { %5315 = shalt.err (!%p5312_p7)
}
  0x8a   :  { %63 = dma.hbm_to_vmem [thread:$0]  %s6184_s2, 1024, %s58_s3, [#allocation6], %s5497_s11, %s5497_s11, %s5498_s16  }
  0x8b   :  { %s5316_s5 = scalar_lea.hbm %s6186_s4, 1024 }
  0x8c   :  { %p5317_p8 = scmp.ne.s32.totalorder %s6186_s4, %s5316_s5  ;;  %p5320_p9 = scmp.lt.u32.totalorder %s5316_s5, %s6186_s4 }
  0x8e   :  { %p5322_p10 = pnand %p5320_p9, %p5317_p8 }
  0x90   :  { %5325 = shalt.err (!%p5322_p10)
}
  0x91   :  { %s5326_s9 = scalar_lea.vmem %s82_s21, 1024  ;;  %p5331_p12 = scmp.lt.s32.totalorder %s82_s21, %s82_s21 }
  0x92   :  { %p5327_p11 = scmp.ne.s32.totalorder %s82_s21, %s5326_s9  ;;  %p5332_p13 = scmp.lt.s32.totalorder %s5326_s9, %s5326_s9 }
  0x94   :  { %p5333_p0 = por %p5332_p13, %p5331_p12 }
  0x96   :  { %p5334_p1 = pnand %p5333_p0, %p5327_p11 }
  0x98   :  { %5337 = shalt.err (!%p5334_p1)
}
  0x99   :  { %87 = dma.hbm_to_vmem [thread:$0]  %s6186_s4, 1024, %s82_s21, [#allocation9], %s5497_s11, %s5497_s11, %s5498_s16  }
  0x9a   :  { %s5501_s30 = smov [#allocation13]   ;;  %s5502_s25 = smov [#allocation16]  }
  0x9b   :  { %s105_s1 = sshll.u32 %s5501_s30, 4  ;;  %s129_s26 = sshll.u32 %s5502_s25, 4  ;;  %s106_s1 = int_to_ptr.vmem [resolvable:$true] %s105_s1  ;;  %s130_s26 = int_to_ptr.vmem [resolvable:$true] %s129_s26 }
  0x9c   :  { %s5338_s0 = scalar_lea.hbm %s6188_s6, 32 }
  0x9d   :  { %p5339_p2 = scmp.ne.s32.totalorder %s6188_s6, %s5338_s0  ;;  %p5342_p3 = scmp.lt.u32.totalorder %s5338_s0, %s6188_s6 }
  0x9f   :  { %p5344_p4 = pnand %p5342_p3, %p5339_p2 }
  0xa1   :  { %5347 = shalt.err (!%p5344_p4)
}
  0xa2   :  { %s5348_s4 = scalar_lea.vmem %s106_s1, 32  ;;  %p5353_p6 = scmp.lt.s32.totalorder %s106_s1, %s106_s1 }
  0xa3   :  { %p5349_p5 = scmp.ne.s32.totalorder %s106_s1, %s5348_s4  ;;  %p5354_p7 = scmp.lt.s32.totalorder %s5348_s4, %s5348_s4 }
  0xa5   :  { %p5355_p8 = por %p5354_p7, %p5353_p6 }
  0xa7   :  { %p5356_p9 = pnand %p5355_p8, %p5349_p5 }
  0xa9   :  { %5359 = shalt.err (!%p5356_p9)
}
  0xaa   :  { %111 = dma.hbm_to_vmem [thread:$0]  %s6188_s6, 32, %s106_s1, [#allocation12], %s5489_s23, %s5489_s23, %s5490_s24  }
  0xab   :  { %s5360_s20 = scalar_lea.hbm %s6190_s8, 1024 }
  0xac   :  { %p5361_p10 = scmp.ne.s32.totalorder %s6190_s8, %s5360_s20  ;;  %p5364_p11 = scmp.lt.u32.totalorder %s5360_s20, %s6190_s8 }
  0xae   :  { %p5366_p12 = pnand %p5364_p11, %p5361_p10 }
  0xb0   :  { %5369 = shalt.err (!%p5366_p12)
}
  0xb1   :  { %s5370_s30 = scalar_lea.vmem %s130_s26, 1024  ;;  %p5375_p0 = scmp.lt.s32.totalorder %s130_s26, %s130_s26 }
  0xb2   :  { %p5371_p13 = scmp.ne.s32.totalorder %s130_s26, %s5370_s30  ;;  %p5376_p1 = scmp.lt.s32.totalorder %s5370_s30, %s5370_s30 }
  0xb4   :  { %p5377_p2 = por %p5376_p1, %p5375_p0 }
  0xb6   :  { %p5378_p3 = pnand %p5377_p2, %p5371_p13 }
  0xb8   :  { %5381 = shalt.err (!%p5378_p3)
}
  0xb9   :  { %135 = dma.hbm_to_vmem [thread:$0]  %s6190_s8, 1024, %s130_s26, [#allocation15], %s5497_s11, %s5497_s11, %s5498_s16  }
  0xba   :  { %s5503_s25 = smov [#allocation19]   ;;  %s5504_s7 = smov [#allocation22]  }
  0xbb   :  { %s153_s27 = sshll.u32 %s5503_s25, 4  ;;  %s177_s0 = sshll.u32 %s5504_s7, 4  ;;  %s154_s27 = int_to_ptr.vmem [resolvable:$true] %s153_s27  ;;  %s178_s0 = int_to_ptr.vmem [resolvable:$true] %s177_s0 }
  0xbc   :  { %s5382_s29 = scalar_lea.hbm %s6192_s10, 2048 }
  0xbd   :  { %p5383_p4 = scmp.ne.s32.totalorder %s6192_s10, %s5382_s29  ;;  %p5386_p5 = scmp.lt.u32.totalorder %s5382_s29, %s6192_s10 }
  0xbf   :  { %p5388_p6 = pnand %p5386_p5, %p5383_p4 }
  0xc1   :  { %5391 = shalt.err (!%p5388_p6)
}
  0xc2   :  { %s5392_s8 = scalar_lea.vmem %s154_s27, 2048  ;;  %p5397_p8 = scmp.lt.s32.totalorder %s154_s27, %s154_s27 }
  0xc3   :  { %p5393_p7 = scmp.ne.s32.totalorder %s154_s27, %s5392_s8  ;;  %p5398_p9 = scmp.lt.s32.totalorder %s5392_s8, %s5392_s8 }
  0xc5   :  { %p5399_p10 = por %p5398_p9, %p5397_p8 }
  0xc7   :  { %p5400_p11 = pnand %p5399_p10, %p5393_p7 }
  0xc9   :  { %5403 = shalt.err (!%p5400_p11)
}
  0xca   :  { %159 = dma.hbm_to_vmem [thread:$0]  %s6192_s10, 2048, %s154_s27, [#allocation18], %s5497_s11, %s5497_s11, %s5498_s16  }
  0xcb   :  { %s5404_s28 = scalar_lea.hbm %s6194_s12, 32 }
  0xcc   :  { %p5405_p12 = scmp.ne.s32.totalorder %s6194_s12, %s5404_s28  ;;  %p5408_p13 = scmp.lt.u32.totalorder %s5404_s28, %s6194_s12 }
  0xce   :  { %p5410_p0 = pnand %p5408_p13, %p5405_p12 }
  0xd0   :  { %5413 = shalt.err (!%p5410_p0)
}
  0xd1   :  { %s5414_s6 = scalar_lea.vmem %s178_s0, 32  ;;  %p5419_p2 = scmp.lt.s32.totalorder %s178_s0, %s178_s0 }
  0xd2   :  { %p5415_p1 = scmp.ne.s32.totalorder %s178_s0, %s5414_s6  ;;  %p5420_p3 = scmp.lt.s32.totalorder %s5414_s6, %s5414_s6 }
  0xd4   :  { %p5421_p4 = por %p5420_p3, %p5419_p2 }
  0xd6   :  { %p5422_p5 = pnand %p5421_p4, %p5415_p1 }
  0xd8   :  { %5425 = shalt.err (!%p5422_p5)
}
  0xd9   :  { %183 = dma.hbm_to_vmem [thread:$0]  %s6194_s12, 32, %s178_s0, [#allocation21], %s5489_s23, %s5489_s23, %s5490_s24  }
  0xda   :  { %s5505_s25 = smov [#allocation23]   ;;  %s5426_s22 = scalar_lea.hbm %s6195_s13, 32 }
  0xdb   :  { %s189_s27 = sshll.u32 %s5505_s25, 4  ;;  %p5427_p6 = scmp.ne.s32.totalorder %s6195_s13, %s5426_s22  ;;  %s190_s27 = int_to_ptr.vmem [resolvable:$true] %s189_s27 }
  0xdc   :  { %p5430_p7 = scmp.lt.u32.totalorder %s5426_s22, %s6195_s13 }
  0xde   :  { %p5432_p8 = pnand %p5430_p7, %p5427_p6 }
  0xe0   :  { %5435 = shalt.err (!%p5432_p8)
}
  0xe1   :  { %s5436_s5 = scalar_lea.vmem %s190_s27, 32  ;;  %p5441_p10 = scmp.lt.s32.totalorder %s190_s27, %s190_s27 }
  0xe2   :  { %p5437_p9 = scmp.ne.s32.totalorder %s190_s27, %s5436_s5  ;;  %p5442_p11 = scmp.lt.s32.totalorder %s5436_s5, %s5436_s5 }
  0xe4   :  { %p5443_p12 = por %p5442_p11, %p5441_p10 }
  0xe6   :  { %p5444_p13 = pnand %p5443_p12, %p5437_p9 }
  0xe8   :  { %5447 = shalt.err (!%p5444_p13)
}
  0xe9   :  { %195 = dma.hbm_to_vmem [thread:$0]  %s6195_s13, 32, %s190_s27, [#allocation24], %s5489_s23, %s5489_s23, %s5490_s24  }
  0xea   :  { %5470 = dma.done.wait [#allocation3], 256  }
  0xeb   :  { %5471 = vsyncadd [#allocation3], 4294967040 }
  0xec   :  { %5472 = dma.done.wait [#allocation6], 1056  }
  0xed   :  { %5473 = vsyncadd [#allocation6], 4294966240 }
  0xee   :  { %5474 = dma.done.wait [#allocation9], 1056  }
  0xef   :  { %5475 = vsyncadd [#allocation9], 4294966240 }
  0xf0   :  { %5476 = dma.done.wait [#allocation12], 64  }
  0xf1   :  { %5477 = vsyncadd [#allocation12], 4294967232 }
  0xf2   :  { %5478 = dma.done.wait [#allocation15], 1056  }
  0xf3   :  { %5479 = vsyncadd [#allocation15], 4294966240 }
  0xf4   :  { %5480 = dma.done.wait [#allocation18], 2080  }
  0xf5   :  { %5481 = vsyncadd [#allocation18], 4294965216 }
  0xf6   :  { %5482 = dma.done.wait [#allocation21], 64  }
  0xf7   :  { %5483 = vsyncadd [#allocation21], 4294967232 }
  0xf8   :  { %5484 = dma.done.wait [#allocation24], 32  }
  0xf9   :  { %5485 = vsyncadd [#allocation24], 4294967264  ;;  %vm253_vm0 = vcmask 261120   ;;  %v242_v0 = vld [vmem:[#allocation7] sm:$0xff]  ;;  %v243_v1 = vld [vmem:[#allocation7 + $0x8] sm:$0xff]  ;;  %v5506_v8 = vmov 0.0  }
  0xfa   :  { %v244_v2 = vld [vmem:[#allocation7 + $0x10] sm:$0xff]  ;;  %v4938_v3 = vpack.c.bf16 %v243_v1, %v242_v0  ;;  %v245_v4 = vld [vmem:[#allocation7 + $0x18] sm:$0xff]  ;;  %4677 = vmatprep.subr.mxu0 %v5506_v8  ;;  %vm5507_vm1 = vmmov 0   ;;  %v4430_v9 = vld [vmem:[#allocation8] ss:$0 sm:$0xff]  ;;  %s5508_s13 = smov 96  }
  0xfb   :  { %v5805_v5 = vld [vmem:[#allocation2] sm:$0xff]  ;;  %v4942_v6 = vpack.c.bf16 %v245_v4, %v244_v2  ;;  %v5809_v7 = vld [vmem:[#allocation2 + $0x8] sm:$0xff]  ;;  %4679 = vmatprep.mubr.msk.f32.mxu0 %vm5507_vm1, %v5506_v8  ;;  %vm343_vm2 = vcmask 64512   ;;  %v5839_v17 = vld [vmem:[#allocation5] ss:$0 sm:$0xff]  ;;  %s5509_s23 = smov 64  }
  0xfc   :  { %4664 = vmatprep.mubr.msk.f32.mxu1 %vm253_vm0, %v5805_v5  ;;  %4939 = vmatprep.subr.bf16.mxu1 %v4938_v3  ;;  %v5842_v22 = vld [vmem:[#allocation5 + $0x1] ss:$0 sm:$0xff]  ;;  %s5510_s24 = smov 88   ;;  %s5511_s8 = smov 120   ;;  %v335_v39 = vld [vmem:[#allocation10] sm:$0xff]  ;;  %vm2197_vm3 = vcmask 523264  }
  0xfd   :  { %4941 = vmatpush3.bf16.msra.mxu1 %v4938_v3  ;;  %s5512_s26 = smov 56   ;;  %s5513_s15 = smov 112  }
  0xfe   :  { %4943 = vmatprep.subr.bf16.mxu1 %v4942_v6  ;;  %s5514_s19 = smov 80   ;;  %s5515_s20 = smov 48  }
  0xff   :  { %s5516_s28 = smov 72   ;;  %s5517_s9 = smov 104  }
 0x100   :  { %s5518_s2 = smov 40   ;;  %s5519_s3 = smov [#allocation25]  }
 0x101   :  { %4945 = vmatpush3.bf16.msra.mxu1 %v4942_v6  ;;  %s4411_s30 = sshll.u32 %s5519_s3, 4  ;;  %s4412_s30 = int_to_ptr.vmem [resolvable:$true] %s4411_s30 }
 0x102   :  { %4667 = vmatprep.subr.mxu1 %v5506_v8  ;;  %s5448_s6 = scalar_lea.vmem %s4412_s30, 256  ;;  %p5453_p1 = scmp.lt.s32.totalorder %s4412_s30, %s4412_s30 }
 0x103   :  { %p5449_p0 = scmp.ne.s32.totalorder %s4412_s30, %s5448_s6  ;;  %p5454_p2 = scmp.lt.s32.totalorder %s5448_s6, %s5448_s6 }
 0x104   :  { %4665 = vmatmul.mubr.msk.f32.vlgmr.msra.gmra.mrb[0].mxu1 %vm253_vm0, %v5809_v7 }
 0x105   :  { %4669 = vmatprep.mubr.msk.f32.mxu1 %vm5507_vm1, %v5506_v8  ;;  %p5455_p3 = por %p5454_p2, %p5453_p1 }
 0x107   :  { %p5456_p4 = pnand %p5455_p3, %p5449_p0 }
 0x1d7   :  { %v4666_v10 = vpop.f32.mrb[0].mxu1 }
 0x1d8   :  { %v326_v11 = vpop.f32.mrb[1].mxu1  ;;  %v5823_v13 = vadd.f32 %v4666_v10, %v4430_v9 }
 0x1d9   :  { %v5819_v12 = vadd.f32 %v4430_v9, %v326_v11 }
 0x1db   :  { %341 = vrot.lane.b32.xlu0 %v5819_v12, %s5508_s13 }
 0x1df   :  { %419 = vrot.lane.b32.xlu0 %v5823_v13, %s5508_s13 }
 0x24d   :  { %v342_v14 = vpop.permute.xlu0 %341 }
 0x24e   :  { %4668 = vmatpush3.xpose.msk.msra.mxu1 %vm343_vm2, %v342_v14 }
 0x24f   :  { %4672 = vmatprep.subr.mxu1 %v5506_v8 }
 0x251   :  { %4670 = vmatmul.mubr.msk.f32.vlgmr.msra.gmra.mrb[2].mxu1 %vm343_vm2, %v5819_v12  ;;  %v420_v15 = vpop.permute.xlu0 %419 }
 0x252   :  { %4673 = vmatpush3.xpose.msk.msra.mxu1 %vm343_vm2, %v420_v15  ;;  %4674 = vmatprep.mubr.msk.f32.mxu1 %vm5507_vm1, %v5506_v8 }
 0x253   :  { %4682 = vmatprep.subr.mxu1 %v5506_v8 }
 0x255   :  { %4675 = vmatmul.mubr.msk.f32.vlgmr.msra.gmra.mrb[4].mxu1 %vm343_vm2, %v5823_v13 }
 0x256   :  { %4684 = vmatprep.mubr.msk.f32.mxu1 %vm5507_vm1, %v5506_v8 }
 0x324   :  { %v414_v16 = vpop.f32.mrb[2].mxu1 }
 0x325   :  { %v495_v18 = vmul.f32 0.35355338, %v414_v16  ;;  %v4671_v19 = vpop.f32.mrb[3].mxu1 }
 0x327   :  { %v509_v20 = vadd.f32 %v5839_v17, %v495_v18 }
 0x328   :  { %v491_v21 = vpop.f32.mrb[4].mxu1 }
 0x329   :  { %v496_v23 = vmul.f32 0.35355338, %v491_v21  ;;  %v4676_v24 = vpop.f32.mrb[5].mxu1  ;;  %v511_v25 = vsel %vm343_vm2, %v509_v20, -inf }
 0x32a   :  { %512 = vmax.xlane.f32.xlu1 %v511_v25 }
 0x32b   :  { %v510_v26 = vadd.f32 %v5842_v22, %v496_v23 }
 0x32d   :  { %v514_v27 = vsel %vm343_vm2, %v510_v26, -inf }
 0x32e   :  { %515 = vmax.xlane.f32.xlu1 %v514_v27 }
 0x33f   :  { %533 = vrot.lane.b32.xlu1 %v5819_v12, %s5509_s23 }
 0x3b7   :  { %v513_v28 = vpop.xlane.xlu1 %512 }
 0x3b8   :  { %v517_v29 = vsub.f32 %v509_v20, %v513_v28 }
 0x3ba   :  { %v519_v30 = vmul.f32 1.442695, %v517_v29 }
 0x3bb   :  { %v516_v31 = vpop.xlane.xlu1 %515 }
 0x3bc   :  { %5050 = vpow2.f32 %v519_v30  ;;  %v518_v32 = vsub.f32 %v510_v26, %v516_v31 }
 0x3be   :  { %v521_v33 = vmul.f32 1.442695, %v518_v32 }
 0x3bf   :  { %v534_v34 = vpop.permute.xlu1 %533 }
 0x3c0   :  { %5052 = vpow2.f32 %v521_v33  ;;  %4678 = vmatpush3.msra.mxu0 %v534_v34 }
 0x3c1   :  { %4687 = vmatprep.subr.mxu0 %v335_v39 }
 0x3c6   :  { %v5051_v35 = vpop.eup %5050 }
 0x3c7   :  { %v523_v36 = vsel %vm343_vm2, %v5051_v35, 0.0 }
 0x3c8   :  { %524 = vadd.xlane.f32.xlu0 %v523_v36 }
 0x3ca   :  { %v5053_v37 = vpop.eup %5052 }
 0x3cb   :  { %v526_v38 = vsel %vm343_vm2, %v5053_v37, 0.0 }
 0x3cc   :  { %527 = vadd.xlane.f32.xlu1 %v526_v38 }
 0x3dd   :  { %609 = vrot.lane.b32.xlu1 %v5823_v13, %s5509_s23 }
 0x3de   :  { %854 = vrot.lane.b32.xlu0 %v5823_v13, %s5510_s24 }
 0x3e1   :  { %776 = vrot.lane.b32.xlu1 %v5819_v12, %s5510_s24 }
 0x3e5   :  { %774 = vrot.lane.b32.xlu1 %v5819_v12, %s5511_s8 }
 0x3e9   :  { %852 = vrot.lane.b32.xlu1 %v5823_v13, %s5511_s8 }
 0x455   :  { %v525_v40 = vpop.xlane.xlu0 %524 }
 0x456   :  { %5054 = vrcp.f32 %v525_v40 }
 0x459   :  { %v528_v41 = vpop.xlane.xlu1 %527  ;;  %v855_v52 = vpop.permute.xlu0 %854 }
 0x45a   :  { %5056 = vrcp.f32 %v528_v41 }
 0x45d   :  { %v610_v42 = vpop.permute.xlu1 %609 }
 0x45e   :  { %4683 = vmatpush3.msra.mxu1 %v610_v42 }
 0x45f   :  { %4692 = vmatprep.subr.mxu1 %v5506_v8 }
 0x460   :  { %v5055_v43 = vpop.eup %5054 }
 0x461   :  { %v531_v44 = vmul.f32 %v5055_v43, %v5051_v35  ;;  %v777_v46 = vpop.permute.xlu1 %776  ;;  %v336_v43 = vld [vmem:[#allocation10 + $0x8] sm:$0xff] }
 0x463   :  { %4680 = vmatmul.mubr.msk.f32.vlgmr.msra.gmra.mrb[0].mxu0 %vm343_vm2, %v531_v44 }
 0x464   :  { %v5057_v45 = vpop.eup %5056  ;;  %4688 = vmatpush3.msra.mxu0 %v335_v39 }
 0x465   :  { %v532_v47 = vmul.f32 %v5057_v45, %v5053_v37  ;;  %4697 = vmatprep.subr.mxu0 %v5506_v8  ;;  %v775_v48 = vpop.permute.xlu1 %774 }
 0x467   :  { %4685 = vmatmul.mubr.msk.f32.vlgmr.msra.gmra.mrb[6].mxu1 %vm343_vm2, %v532_v47 }
 0x468   :  { %4693 = vmatpush3.xpose.msk.msra.mxu1 %vm343_vm2, %v777_v46  ;;  %4694 = vmatprep.mubr.msk.f32.mxu1 %vm5507_vm1, %v5506_v8 }
 0x469   :  { %4702 = vmatprep.subr.mxu1 %v5506_v8  ;;  %v853_v54 = vpop.permute.xlu1 %852 }
 0x46b   :  { %4695 = vmatmul.mubr.msk.f32.vlgmr.msra.gmra.mrb[8].mxu1 %vm343_vm2, %v775_v48 }
 0x46c   :  { %4704 = vmatprep.mubr.msk.f32.mxu1 %vm5507_vm1, %v5506_v8 }
 0x536   :  { %v605_v49 = vpop.f32.mrb[0].mxu0 }
 0x537   :  { %v4681_v50 = vpop.f32.mrb[1].mxu0  ;;  %4689 = vmatprep.mubr.msk.f32.mxu0 %vm343_vm2, %v605_v49 }
 0x53a   :  { %v681_v51 = vpop.f32.mrb[6].mxu1 }
 0x53b   :  { %v4686_v53 = vpop.f32.mrb[7].mxu1  ;;  %4690 = vmatmul.mubr.msk.f32.vlgmr.msra.gmra.mrb[2].mxu0 %vm343_vm2, %v681_v51 }
 0x53c   :  { %4698 = vmatpush3.xpose.msk.msra.mxu0 %vm343_vm2, %v855_v52  ;;  %4699 = vmatprep.mubr.msk.f32.mxu0 %vm5507_vm1, %v5506_v8 }
 0x53d   :  { %4707 = vmatprep.subr.mxu0 %v5506_v8 }
 0x53e   :  { %v848_v55 = vpop.f32.mrb[8].mxu1 }
 0x53f   :  { %v930_v56 = vmul.f32 0.35355338, %v848_v55  ;;  %v4696_v57 = vpop.f32.mrb[9].mxu1  ;;  %4700 = vmatmul.mubr.msk.f32.vlgmr.msra.gmra.mrb[4].mxu0 %vm343_vm2, %v853_v54 }
 0x540   :  { %4709 = vmatprep.mubr.msk.f32.mxu0 %vm5507_vm1, %v5506_v8 }
 0x541   :  { %v932_v58 = vadd.f32 %v5839_v17, %v930_v56 }
 0x543   :  { %v934_v59 = vsel %vm343_vm2, %v932_v58, -inf }
 0x544   :  { %935 = vmax.xlane.f32.xlu1 %v934_v59 }
 0x555   :  { %956 = vrot.lane.b32.xlu1 %v5819_v12, %s5512_s26 }
 0x559   :  { %1191 = vrot.lane.b32.xlu1 %v5819_v12, %s5513_s15 }
 0x55d   :  { %1271 = vrot.lane.b32.xlu1 %v5823_v13, %s5514_s19 }
 0x561   :  { %1269 = vrot.lane.b32.xlu1 %v5823_v13, %s5513_s15 }
 0x5d1   :  { %v936_v60 = vpop.xlane.xlu1 %935 }
 0x5d2   :  { %v940_v61 = vsub.f32 %v932_v58, %v936_v60  ;;  %v337_v58 = vld [vmem:[#allocation10 + $0x10] sm:$0xff] }
 0x5d4   :  { %v942_v62 = vmul.f32 1.442695, %v940_v61 }
 0x5d5   :  { %v957_v63 = vpop.permute.xlu1 %956 }
 0x5d6   :  { %5058 = vpow2.f32 %v942_v62  ;;  %4703 = vmatpush3.msra.mxu1 %v957_v63 }
 0x5d7   :  { %4717 = vmatprep.subr.mxu1 %v5506_v8 }
 0x5d9   :  { %v1192_v11 = vpop.permute.xlu1 %1191 }
 0x5dd   :  { %v1272_v18 = vpop.permute.xlu1 %1271 }
 0x5e0   :  { %v5059_v0 = vpop.eup %5058 }
 0x5e1   :  { %v946_v1 = vsel %vm343_vm2, %v5059_v0, 0.0  ;;  %v1270_v19 = vpop.permute.xlu1 %1269 }
 0x5e2   :  { %947 = vadd.xlane.f32.xlu0 %v946_v1 }
 0x5f8   :  { %1193 = vrot.lane.b32.xlu0 %v5819_v12, %s5514_s19 }
 0x612   :  { %v926_v2 = vpop.f32.mrb[4].mxu0 }
 0x613   :  { %v931_v3 = vmul.f32 0.35355338, %v926_v2  ;;  %v4701_v4 = vpop.f32.mrb[5].mxu0 }
 0x615   :  { %v933_v6 = vadd.f32 %v5842_v22, %v931_v3 }
 0x617   :  { %v937_v9 = vsel %vm343_vm2, %v933_v6, -inf }
 0x618   :  { %938 = vmax.xlane.f32.xlu1 %v937_v9 }
 0x66f   :  { %v948_v10 = vpop.xlane.xlu0 %947 }
 0x670   :  { %5060 = vrcp.f32 %v948_v10 }
 0x673   :  { %v1194_v16 = vpop.permute.xlu0 %1193 }
 0x67a   :  { %v5061_v14 = vpop.eup %5060 }
 0x67b   :  { %v954_v15 = vmul.f32 %v5061_v14, %v5059_v0 }
 0x67d   :  { %4705 = vmatmul.mubr.msk.f32.vlgmr.msra.gmra.mrb[10].mxu1 %vm343_vm2, %v954_v15 }
 0x67e   :  { %4718 = vmatpush3.xpose.msk.msra.mxu1 %vm343_vm2, %v1194_v16  ;;  %4719 = vmatprep.mubr.msk.f32.mxu1 %vm5507_vm1, %v5506_v8 }
 0x67f   :  { %4722 = vmatprep.subr.mxu1 %v5506_v8 }
 0x681   :  { %4720 = vmatmul.mubr.msk.f32.vlgmr.msra.gmra.mrb[12].mxu1 %vm343_vm2, %v1192_v11 }
 0x682   :  { %4723 = vmatpush3.xpose.msk.msra.mxu1 %vm343_vm2, %v1272_v18  ;;  %4724 = vmatprep.mubr.msk.f32.mxu1 %vm5507_vm1, %v5506_v8 }
 0x683   :  { %4732 = vmatprep.subr.mxu1 %v5506_v8 }
 0x685   :  { %4725 = vmatmul.mubr.msk.f32.vlgmr.msra.gmra.mrb[14].mxu1 %vm343_vm2, %v1270_v19 }
 0x686   :  { %4734 = vmatprep.mubr.msk.f32.mxu1 %vm5507_vm1, %v5506_v8 }
 0x6a5   :  { %v939_v20 = vpop.xlane.xlu1 %938 }
 0x6a6   :  { %v941_v21 = vsub.f32 %v933_v6, %v939_v20 }
 0x6a8   :  { %v944_v23 = vmul.f32 1.442695, %v941_v21 }
 0x6aa   :  { %5062 = vpow2.f32 %v944_v23 }
 0x6b4   :  { %v5063_v24 = vpop.eup %5062 }
 0x6b5   :  { %v949_v25 = vsel %vm343_vm2, %v5063_v24, 0.0 }
 0x6b6   :  { %950 = vadd.xlane.f32.xlu0 %v949_v25 }
 0x6cc   :  { %1032 = vrot.lane.b32.xlu0 %v5823_v13, %s5512_s26 }
 0x6d0   :  { %1449 = vrot.lane.b32.xlu0 %v5823_v13, %s5515_s20 }
 0x6d4   :  { %1610 = vrot.lane.b32.xlu0 %v5819_v12, %s5516_s28 }
 0x6d8   :  { %1688 = vrot.lane.b32.xlu0 %v5823_v13, %s5516_s28 }
 0x6dc   :  { %1608 = vrot.lane.b32.xlu0 %v5819_v12, %s5517_s9 }
 0x743   :  { %v951_v26 = vpop.xlane.xlu0 %950 }
 0x744   :  { %5064 = vrcp.f32 %v951_v26 }
 0x747   :  { %v1033_v27 = vpop.permute.xlu0 %1032 }
 0x748   :  { %4708 = vmatpush3.msra.mxu0 %v1033_v27 }
 0x749   :  { %4712 = vmatprep.subr.mxu0 %v336_v43 }
 0x74b   :  { %v1450_v28 = vpop.permute.xlu0 %1449 }
 0x74c   :  { %4733 = vmatpush3.msra.mxu1 %v1450_v28 }
 0x74d   :  { %4742 = vmatprep.subr.mxu1 %v5506_v8 }
 0x74e   :  { %v5065_v29 = vpop.eup %5064 }
 0x74f   :  { %v955_v30 = vmul.f32 %v5065_v29, %v5063_v24  ;;  %v1611_v60 = vpop.permute.xlu0 %1610 }
 0x750   :  { %v1028_v31 = vpop.f32.mrb[10].mxu1 }
 0x751   :  { %v4706_v32 = vpop.f32.mrb[11].mxu1  ;;  %4710 = vmatmul.mubr.msk.f32.vlgmr.msra.gmra.mrb[6].mxu0 %vm343_vm2, %v955_v30 }
 0x752   :  { %4714 = vmatprep.mubr.msk.f32.mxu0 %vm343_vm2, %v1028_v31  ;;  %4713 = vmatpush3.msra.mxu0 %v336_v43 }
 0x753   :  { %4727 = vmatprep.subr.mxu0 %v5506_v8  ;;  %v1689_v0 = vpop.permute.xlu0 %1688 }
 0x754   :  { %v1265_v33 = vpop.f32.mrb[12].mxu1 }
 0x755   :  { %v1347_v34 = vmul.f32 0.35355338, %v1265_v33  ;;  %v4721_v35 = vpop.f32.mrb[13].mxu1 }
 0x757   :  { %v1349_v36 = vadd.f32 %v5839_v17, %v1347_v34  ;;  %v1609_v2 = vpop.permute.xlu0 %1608 }
 0x758   :  { %v1343_v37 = vpop.f32.mrb[14].mxu1 }
 0x759   :  { %v1348_v38 = vmul.f32 0.35355338, %v1343_v37  ;;  %v4726_v39 = vpop.f32.mrb[15].mxu1  ;;  %v1351_v40 = vsel %vm343_vm2, %v1349_v36, -inf }
 0x75a   :  { %1352 = vmax.xlane.f32.xlu1 %v1351_v40  ;;  %v338_v39 = vld [vmem:[#allocation10 + $0x18] sm:$0xff] }
 0x75b   :  { %v1350_v41 = vadd.f32 %v5842_v22, %v1348_v38 }
 0x75d   :  { %v1354_v42 = vsel %vm343_vm2, %v1350_v41, -inf }
 0x75e   :  { %1355 = vmax.xlane.f32.xlu1 %v1354_v42 }
 0x7e7   :  { %v1353_v44 = vpop.xlane.xlu1 %1352 }
 0x7e8   :  { %v1357_v45 = vsub.f32 %v1349_v36, %v1353_v44 }
 0x7ea   :  { %v1359_v46 = vmul.f32 1.442695, %v1357_v45 }
 0x7eb   :  { %v1356_v47 = vpop.xlane.xlu1 %1355 }
 0x7ec   :  { %5066 = vpow2.f32 %v1359_v46  ;;  %v1358_v48 = vsub.f32 %v1350_v41, %v1356_v47 }
 0x7ee   :  { %v1361_v49 = vmul.f32 1.442695, %v1358_v48 }
 0x7f0   :  { %5068 = vpow2.f32 %v1361_v49 }
 0x7f6   :  { %v5067_v50 = vpop.eup %5066 }
 0x7f7   :  { %v1363_v51 = vsel %vm343_vm2, %v5067_v50, 0.0 }
 0x7f8   :  { %1364 = vadd.xlane.f32.xlu1 %v1363_v51 }
 0x7fa   :  { %v5069_v52 = vpop.eup %5068 }
 0x7fb   :  { %v1366_v53 = vsel %vm343_vm2, %v5069_v52, 0.0 }
 0x7fc   :  { %1367 = vadd.xlane.f32.xlu1 %v1366_v53 }
 0x80d   :  { %1373 = vrot.lane.b32.xlu1 %v5819_v12, %s5515_s20 }
 0x811   :  { %1686 = vrot.lane.b32.xlu1 %v5823_v13, %s5517_s9 }
 0x824   :  { %v1104_v54 = vpop.f32.mrb[6].mxu0 }
 0x825   :  { %v4711_v55 = vpop.f32.mrb[7].mxu0  ;;  %4715 = vmatmul.mubr.msk.f32.vlgmr.msra.gmra.mrb[2].mxu0 %vm343_vm2, %v1104_v54 }
 0x826   :  { %4729 = vmatprep.mubr.msk.f32.mxu0 %vm5507_vm1, %v5506_v8 }
 0x885   :  { %v1365_v56 = vpop.xlane.xlu1 %1364 }
 0x886   :  { %5070 = vrcp.f32 %v1365_v56 }
 0x889   :  { %v1368_v57 = vpop.xlane.xlu1 %1367 }
 0x88a   :  { %5072 = vrcp.f32 %v1368_v57 }
 0x88d   :  { %v1374_v59 = vpop.permute.xlu1 %1373 }
 0x88e   :  { %4728 = vmatpush3.msra.mxu0 %v1374_v59 }
 0x88f   :  { %4737 = vmatprep.subr.mxu0 %v337_v58 }
 0x890   :  { %v5071_v61 = vpop.eup %5070 }
 0x891   :  { %v1371_v62 = vmul.f32 %v5071_v61, %v5067_v50  ;;  %v1687_v10 = vpop.permute.xlu1 %1686 }
 0x893   :  { %4730 = vmatmul.mubr.msk.f32.vlgmr.msra.gmra.mrb[8].mxu0 %vm343_vm2, %v1371_v62 }
 0x894   :  { %v5073_v63 = vpop.eup %5072  ;;  %4738 = vmatpush3.msra.mxu0 %v337_v58 }
 0x895   :  { %v1372_v1 = vmul.f32 %v5073_v63, %v5069_v52  ;;  %4747 = vmatprep.subr.mxu0 %v5506_v8 }
 0x897   :  { %4735 = vmatmul.mubr.msk.f32.vlgmr.msra.gmra.mrb[16].mxu1 %vm343_vm2, %v1372_v1 }
 0x898   :  { %4743 = vmatpush3.xpose.msk.msra.mxu1 %vm343_vm2, %v1611_v60  ;;  %4744 = vmatprep.mubr.msk.f32.mxu1 %vm5507_vm1, %v5506_v8 }
 0x899   :  { %4752 = vmatprep.subr.mxu1 %v5506_v8 }
 0x89b   :  { %4745 = vmatmul.mubr.msk.f32.vlgmr.msra.gmra.mrb[18].mxu1 %vm343_vm2, %v1609_v2  ;;  %v2074_v2 = vld [vmem:[#allocation16 + $0x10] sm:$0xff] }
 0x89c   :  { %4754 = vmatprep.mubr.msk.f32.mxu1 %vm5507_vm1, %v5506_v8 }
 0x966   :  { %v1445_v3 = vpop.f32.mrb[8].mxu0 }
 0x967   :  { %v4731_v4 = vpop.f32.mrb[9].mxu0  ;;  %4739 = vmatprep.mubr.msk.f32.mxu0 %vm343_vm2, %v1445_v3  ;;  %v2075_v3 = vld [vmem:[#allocation16 + $0x18] sm:$0xff] }
 0x968   :  { %v4950_v4 = vpack.c.bf16 %v2075_v3, %v2074_v2 }
 0x96a   :  { %v1521_v6 = vpop.f32.mrb[16].mxu1 }
 0x96b   :  { %v4736_v9 = vpop.f32.mrb[17].mxu1  ;;  %4740 = vmatmul.mubr.msk.f32.vlgmr.msra.gmra.mrb[2].mxu0 %vm343_vm2, %v1521_v6 }
 0x96c   :  { %4748 = vmatpush3.xpose.msk.msra.mxu0 %vm343_vm2, %v1689_v0  ;;  %4749 = vmatprep.mubr.msk.f32.mxu0 %vm5507_vm1, %v5506_v8  ;;  %v2073_v0 = vld [vmem:[#allocation16 + $0x8] sm:$0xff] }
 0x96d   :  { %4757 = vmatprep.subr.mxu0 %v5506_v8 }
 0x96e   :  { %v1682_v11 = vpop.f32.mrb[18].mxu1 }
 0x96f   :  { %v1764_v14 = vmul.f32 0.35355338, %v1682_v11  ;;  %v4746_v15 = vpop.f32.mrb[19].mxu1  ;;  %4750 = vmatmul.mubr.msk.f32.vlgmr.msra.gmra.mrb[10].mxu0 %vm343_vm2, %v1687_v10 }
 0x970   :  { %4759 = vmatprep.mubr.msk.f32.mxu0 %vm5507_vm1, %v5506_v8 }
 0x971   :  { %v1766_v16 = vadd.f32 %v5839_v17, %v1764_v14 }
 0x973   :  { %v1768_v18 = vsel %vm343_vm2, %v1766_v16, -inf }
 0x974   :  { %1769 = vmax.xlane.f32.xlu0 %v1768_v18  ;;  %v4468_v18 = vld [vmem:[#allocation13] ss:$0 sm:$0xff] }
 0xa01   :  { %v1770_v19 = vpop.xlane.xlu0 %1769 }
 0xa02   :  { %v1774_v20 = vsub.f32 %v1766_v16, %v1770_v19 }
 0xa04   :  { %v1776_v21 = vmul.f32 1.442695, %v1774_v20 }
 0xa06   :  { %5074 = vpow2.f32 %v1776_v21 }
 0xa10   :  { %v5075_v23 = vpop.eup %5074 }
 0xa11   :  { %v1780_v24 = vsel %vm343_vm2, %v5075_v23, 0.0 }
 0xa12   :  { %1781 = vadd.xlane.f32.xlu0 %v1780_v24 }
 0xa42   :  { %v1760_v25 = vpop.f32.mrb[10].mxu0 }
 0xa43   :  { %v1765_v26 = vmul.f32 0.35355338, %v1760_v25  ;;  %v4751_v27 = vpop.f32.mrb[11].mxu0 }
 0xa45   :  { %v1767_v28 = vadd.f32 %v5842_v22, %v1765_v26 }
 0xa47   :  { %v1771_v29 = vsel %vm343_vm2, %v1767_v28, -inf }
 0xa48   :  { %1772 = vmax.xlane.f32.xlu1 %v1771_v29  ;;  %v2183_v29 = vld [vmem:[#allocation19 + $0x8] sm:$0xff] }
 0xa59   :  { %1790 = vrot.lane.b32.xlu1 %v5819_v12, %s5518_s2 }
 0xa9f   :  { %v1782_v30 = vpop.xlane.xlu0 %1781 }
 0xaa0   :  { %5076 = vrcp.f32 %v1782_v30 }
 0xaaa   :  { %v5077_v32 = vpop.eup %5076 }
 0xaab   :  { %v1788_v35 = vmul.f32 %v5077_v32, %v5075_v23  ;;  %v4469_v23 = vld [vmem:[#allocation14] ss:$0 sm:$0xff] }
 0xaac   :  { %v2185_v32 = vld [vmem:[#allocation19 + $0x18] sm:$0xff] }
 0xad5   :  { %v1773_v31 = vpop.xlane.xlu1 %1772 }
 0xad6   :  { %v1775_v33 = vsub.f32 %v1767_v28, %v1773_v31  ;;  %v2182_v28 = vld [vmem:[#allocation19] sm:$0xff]  ;;  %v2184_v31 = vld [vmem:[#allocation19 + $0x10] sm:$0xff] }
 0xad7   :  { %v4954_v30 = vpack.c.bf16 %v2183_v29, %v2182_v28 }
 0xad8   :  { %v1778_v34 = vmul.f32 1.442695, %v1775_v33  ;;  %v4958_v33 = vpack.c.bf16 %v2185_v32, %v2184_v31 }
 0xad9   :  { %v1791_v36 = vpop.permute.xlu1 %1790 }
 0xada   :  { %5078 = vpow2.f32 %v1778_v34  ;;  %4753 = vmatpush3.msra.mxu1 %v1791_v36  ;;  %v2186_v34 = vld [vmem:[#allocation19 + $0x20] sm:$0xff] }
 0xadb   :  { %4755 = vmatmul.mubr.msk.f32.vlgmr.msra.gmra.mrb[20].mxu1 %vm343_vm2, %v1788_v35  ;;  %v2187_v35 = vld [vmem:[#allocation19 + $0x28] sm:$0xff] }
 0xadc   :  { %v4962_v36 = vpack.c.bf16 %v2187_v35, %v2186_v34  ;;  %v4476_v34 = vld [vmem:[#allocation22] ss:$0 sm:$0xff] }
 0xae4   :  { %v5079_v37 = vpop.eup %5078 }
 0xae5   :  { %v1783_v38 = vsel %vm343_vm2, %v5079_v37, 0.0 }
 0xae6   :  { %1784 = vadd.xlane.f32.xlu0 %v1783_v38  ;;  %v2189_v38 = vld [vmem:[#allocation19 + $0x38] sm:$0xff] }
 0xafc   :  { %1866 = vrot.lane.b32.xlu0 %v5823_v13, %s5518_s2  ;;  %v4443_v13 = vld [vmem:[#allocation11] ss:$0 sm:$0xff] }
 0xb73   :  { %v1785_v12 = vpop.xlane.xlu0 %1784 }
 0xb74   :  { %5080 = vrcp.f32 %v1785_v12 }
 0xb77   :  { %v1867_v40 = vpop.permute.xlu0 %1866 }
 0xb78   :  { %4758 = vmatpush3.msra.mxu0 %v1867_v40 }
 0xb79   :  { %4762 = vmatprep.subr.mxu0 %v338_v39 }
 0xb7e   :  { %v5081_v41 = vpop.eup %5080 }
 0xb7f   :  { %v1789_v42 = vmul.f32 %v5081_v41, %v5079_v37  ;;  %v2188_v37 = vld [vmem:[#allocation19 + $0x30] sm:$0xff] }
 0xb80   :  { %v4966_v12 = vpack.c.bf16 %v2189_v38, %v2188_v37  ;;  %v4477_v38 = vld [vmem:[#allocation23] ss:$0 sm:$0xff] }
 0xb81   :  { %4760 = vmatmul.mubr.msk.f32.vlgmr.msra.gmra.mrb[12].mxu0 %vm343_vm2, %v1789_v42 }
 0xb82   :  { %4763 = vmatpush3.msra.mxu0 %v338_v39  ;;  %v4470_v39 = vld [vmem:[#allocation17] ss:$0 sm:$0xff] }
 0xb83   :  { %4955 = vmatprep.subr.bf16.mxu0 %v4954_v30 }
 0xbae   :  { %v1862_v43 = vpop.f32.mrb[20].mxu1 }
 0xbaf   :  { %v4756_v44 = vpop.f32.mrb[21].mxu1  ;;  %4764 = vmatprep.mubr.msk.f32.mxu0 %vm343_vm2, %v1862_v43 }
 0xc54   :  { %v1938_v45 = vpop.f32.mrb[12].mxu0 }
 0xc55   :  { %v4761_v46 = vpop.f32.mrb[13].mxu0  ;;  %4765 = vmatmul.mubr.msk.f32.vlgmr.msra.gmra.mrb[2].mxu0 %vm343_vm2, %v1938_v45 }
 0xc56   :  { %4957 = vmatpush3.bf16.msra.mxu0 %v4954_v30 }
 0xc57   :  { %4959 = vmatprep.subr.bf16.mxu0 %v4958_v33 }
 0xc5a   :  { %4961 = vmatpush3.bf16.msra.mxu0 %v4958_v33 }
 0xc5b   :  { %4963 = vmatprep.subr.bf16.mxu0 %v4962_v36 }
 0xc5e   :  { %4965 = vmatpush3.bf16.msra.mxu0 %v4962_v36 }
 0xc5f   :  { %4967 = vmatprep.subr.bf16.mxu0 %v4966_v12 }
 0xc62   :  { %4969 = vmatpush3.bf16.msra.mxu0 %v4966_v12 }
 0xc63   :  { %4818 = vmatprep.subr.mxu0 %v5506_v8 }
 0xd28   :  { %v4766_v47 = vpop.f32.mrb[2].mxu0 }
 0xd29   :  { %v5002_v48 = vadd.f32 %v4766_v47, %v4443_v13  ;;  %v2014_v49 = vpop.f32.mrb[3].mxu0 }
 0xd2a   :  { %v5003_v50 = vadd.f32 %v4443_v13, %v2014_v49 }
 0xd2b   :  { %v2026_v51 = vadd.f32 %v5002_v48, %v5809_v7 }
 0xd2c   :  { %v2025_v52 = vadd.f32 %v5003_v50, %v5805_v5  ;;  %v2072_v5 = vld [vmem:[#allocation16] sm:$0xff] }
 0xd2d   :  { %v2032_v53 = vsel %vm253_vm0, %v2026_v51, 0.0  ;;  %v4946_v1 = vpack.c.bf16 %v2073_v0, %v2072_v5 }
 0xd2e   :  { %2033 = vadd.xlane.f32.xlu0 %v2032_v53  ;;  %v2029_v54 = vsel %vm253_vm0, %v2025_v52, 0.0 }
 0xd2f   :  { %2030 = vadd.xlane.f32.xlu1 %v2029_v54  ;;  %4947 = vmatprep.subr.bf16.mxu1 %v4946_v1 }
 0xd30   :  { %4949 = vmatpush3.bf16.msra.mxu1 %v4946_v1 }
 0xd31   :  { %4951 = vmatprep.subr.bf16.mxu1 %v4950_v4 }
 0xd34   :  { %4953 = vmatpush3.bf16.msra.mxu1 %v4950_v4 }
 0xdbb   :  { %v2034_v55 = vpop.xlane.xlu0 %2033 }
 0xdbc   :  { %v2037_v56 = vmul.f32 0.03125, %v2034_v55  ;;  %v2031_v57 = vpop.xlane.xlu1 %2030 }
 0xdbd   :  { %v2036_v58 = vmul.f32 0.03125, %v2031_v57 }
 0xdbe   :  { %v2039_v59 = vsub.f32 %v2026_v51, %v2037_v56 }
 0xdbf   :  { %v2038_v60 = vsub.f32 %v2025_v52, %v2036_v58 }
 0xdc0   :  { %v2041_v61 = vmul.f32 %v2039_v59, %v2039_v59 }
 0xdc1   :  { %v2040_v62 = vmul.f32 %v2038_v60, %v2038_v60 }
 0xdc2   :  { %v2045_v63 = vsel %vm253_vm0, %v2041_v61, 0.0  ;;  %v4473_v61 = vld [vmem:[#allocation20] ss:$0 sm:$0xff] }
 0xdc3   :  { %2046 = vadd.xlane.f32.xlu0 %v2045_v63  ;;  %v2042_v7 = vsel %vm253_vm0, %v2040_v62, 0.0 }
 0xdc4   :  { %2043 = vadd.xlane.f32.xlu1 %v2042_v7 }
 0xe50   :  { %v2047_v6 = vpop.xlane.xlu0 %2046 }
 0xe51   :  { %v2049_v9 = vmul.f32 0.03125, %v2047_v6  ;;  %v2044_v10 = vpop.xlane.xlu1 %2043 }
 0xe52   :  { %v2048_v11 = vmul.f32 0.03125, %v2044_v10 }
 0xe53   :  { %v2051_v14 = vadd.f32 1e-12, %v2049_v9 }
 0xe54   :  { %v2050_v15 = vadd.f32 1e-12, %v2048_v11 }
 0xe55   :  { %5082 = vrsqrt.f32 %v2051_v14 }
 0xe56   :  { %5084 = vrsqrt.f32 %v2050_v15 }
 0xe5f   :  { %v5083_v16 = vpop.eup %5082 }
 0xe60   :  { %v5085_v19 = vpop.eup %5084  ;;  %v2055_v20 = vmul.f32 %v5083_v16, %v2039_v59 }
 0xe61   :  { %v2054_v21 = vmul.f32 %v5085_v19, %v2038_v60 }
 0xe62   :  { %v2063_v24 = vmul.f32 %v4468_v18, %v2055_v20  ;;  %v2326_v20 = vld [vmem:[#allocation7 + $0x20] sm:$0xff] }
 0xe63   :  { %v2062_v25 = vmul.f32 %v4468_v18, %v2054_v21  ;;  %v2327_v21 = vld [vmem:[#allocation7 + $0x28] sm:$0xff] }
 0xe64   :  { %v2071_v27 = vadd.f32 %v4469_v23, %v2063_v24  ;;  %v2328_v24 = vld [vmem:[#allocation7 + $0x30] sm:$0xff] }
 0xe65   :  { %v2070_v26 = vadd.f32 %v4469_v23, %v2062_v25  ;;  %v4970_v23 = vpack.c.bf16 %v2327_v21, %v2326_v20  ;;  %v2329_v25 = vld [vmem:[#allocation7 + $0x38] sm:$0xff] }
 0xe67   :  { %4775 = vmatprep.mubr.msk.f32.mxu1 %vm253_vm0, %v2070_v26  ;;  %4971 = vmatprep.subr.bf16.mxu1 %v4970_v23 }
 0xe68   :  { %4776 = vmatmul.mubr.msk.f32.vlgmr.msra.gmra.mrb[22].mxu1 %vm253_vm0, %v2071_v27 }
 0xe69   :  { %4973 = vmatpush3.bf16.msra.mxu1 %v4970_v23 }
 0xf3b   :  { %v4777_v40 = vpop.f32.mrb[22].mxu1 }
 0xf3c   :  { %v2161_v41 = vadd.f32 %v4777_v40, %v4470_v39  ;;  %v2155_v42 = vpop.f32.mrb[23].mxu1 }
 0xf3d   :  { %v2156_v43 = vadd.f32 %v4470_v39, %v2155_v42  ;;  %v4478_v42 = vld [vmem:[#allocation8 + $0x1] ss:$0 sm:$0xff] }
 0xf3e   :  { %v2167_v44 = vmul.f32 0.044715, %v2161_v41  ;;  %v2165_v58 = vmul.f32 0.5, %v2161_v41 }
 0xf3f   :  { %v2166_v45 = vmul.f32 0.044715, %v2156_v43  ;;  %v2164_v56 = vmul.f32 0.5, %v2156_v43 }
 0xf40   :  { %v2169_v46 = vmul.f32 %v2167_v44, %v2161_v41 }
 0xf41   :  { %v2168_v13 = vmul.f32 %v2166_v45, %v2156_v43 }
 0xf42   :  { %v2171_v47 = vmul.f32 %v2169_v46, %v2161_v41 }
 0xf43   :  { %v2170_v48 = vmul.f32 %v2168_v13, %v2156_v43 }
 0xf44   :  { %v2173_v49 = vadd.f32 %v2171_v47, %v2161_v41 }
 0xf45   :  { %v2172_v50 = vadd.f32 %v2170_v48, %v2156_v43 }
 0xf46   :  { %v2175_v51 = vmul.f32 0.7978846, %v2173_v49 }
 0xf47   :  { %v2174_v52 = vmul.f32 0.7978846, %v2172_v50 }
 0xf48   :  { %5086 = vtanh.f32 %v2175_v51 }
 0xf49   :  { %5088 = vtanh.f32 %v2174_v52 }
 0xf52   :  { %v5087_v53 = vpop.eup %5086 }
 0xf53   :  { %v5089_v54 = vpop.eup %5088  ;;  %v2179_v55 = vadd.f32 1.0, %v5087_v53 }
 0xf54   :  { %v2178_v57 = vadd.f32 1.0, %v5089_v54 }
 0xf55   :  { %v2181_v60 = vmul.f32 %v2179_v55, %v2165_v58 }
 0xf56   :  { %v2180_v59 = vmul.f32 %v2178_v57, %v2164_v56 }
 0xf58   :  { %4794 = vmatprep.mubr.msk.f32.mxu0 %vm2197_vm3, %v2180_v59 }
 0xf59   :  { %4795 = vmatmul.mubr.msk.f32.vlgmr.msra.gmra.mrb[14].mxu0 %vm2197_vm3, %v2181_v60 }
 0xf5a   :  { %4820 = vmatprep.mubr.msk.f32.mxu0 %vm5507_vm1, %v5506_v8 }
0x102c   :  { %v4796_v62 = vpop.f32.mrb[14].mxu0 }
0x102d   :  { %v2276_v63 = vadd.f32 %v4796_v62, %v4473_v61  ;;  %v2270_v7 = vpop.f32.mrb[15].mxu0 }
0x102e   :  { %v2271_v5 = vadd.f32 %v4473_v61, %v2270_v7 }
0x102f   :  { %v2280_v0 = vadd.f32 %v2276_v63, %v2071_v27 }
0x1030   :  { %v2279_v1 = vadd.f32 %v2271_v5, %v2070_v26  ;;  %v4974_v26 = vpack.c.bf16 %v2329_v25, %v2328_v24 }
0x1031   :  { %v2286_v2 = vsel %vm253_vm0, %v2280_v0, 0.0 }
0x1032   :  { %2287 = vadd.xlane.f32.xlu0 %v2286_v2  ;;  %v2283_v3 = vsel %vm253_vm0, %v2279_v1, 0.0  ;;  %4975 = vmatprep.subr.bf16.mxu1 %v4974_v26 }
0x1033   :  { %2284 = vadd.xlane.f32.xlu1 %v2283_v3  ;;  %4977 = vmatpush3.bf16.msra.mxu1 %v4974_v26 }
0x1034   :  { %4808 = vmatprep.subr.mxu1 %v5506_v8 }
0x10bf   :  { %v2288_v4 = vpop.xlane.xlu0 %2287 }
0x10c0   :  { %v2290_v6 = vmul.f32 0.03125, %v2288_v4  ;;  %v2285_v9 = vpop.xlane.xlu1 %2284 }
0x10c1   :  { %v2289_v10 = vmul.f32 0.03125, %v2285_v9 }
0x10c2   :  { %v2292_v11 = vsub.f32 %v2280_v0, %v2290_v6 }
0x10c3   :  { %v2291_v14 = vsub.f32 %v2279_v1, %v2289_v10  ;;  %v2420_v1 = vld [vmem:[#allocation10 + $0x20] sm:$0xff] }
0x10c4   :  { %v2294_v15 = vmul.f32 %v2292_v11, %v2292_v11 }
0x10c5   :  { %v2293_v16 = vmul.f32 %v2291_v14, %v2291_v14 }
0x10c6   :  { %v2298_v18 = vsel %vm253_vm0, %v2294_v15, 0.0 }
0x10c7   :  { %2299 = vadd.xlane.f32.xlu0 %v2298_v18  ;;  %v2295_v19 = vsel %vm253_vm0, %v2293_v16, 0.0 }
0x10c8   :  { %2296 = vadd.xlane.f32.xlu1 %v2295_v19 }
0x1154   :  { %v2300_v27 = vpop.xlane.xlu0 %2299 }
0x1155   :  { %v2302_v28 = vmul.f32 0.03125, %v2300_v27  ;;  %v2297_v29 = vpop.xlane.xlu1 %2296  ;;  %v6059_v27 = vld [vmem:[#allocation5] ss:$0 sm:$0xff] }
0x1156   :  { %v2301_v30 = vmul.f32 0.03125, %v2297_v29 }
0x1157   :  { %v2304_v31 = vadd.f32 1e-12, %v2302_v28 }
0x1158   :  { %v2303_v32 = vadd.f32 1e-12, %v2301_v30 }
0x1159   :  { %5090 = vrsqrt.f32 %v2304_v31 }
0x115a   :  { %5092 = vrsqrt.f32 %v2303_v32 }
0x1163   :  { %v5091_v33 = vpop.eup %5090 }
0x1164   :  { %v5093_v35 = vpop.eup %5092  ;;  %v2308_v36 = vmul.f32 %v5091_v33, %v2292_v11 }
0x1165   :  { %v2307_v37 = vmul.f32 %v5093_v35, %v2291_v14 }
0x1166   :  { %v2316_v12 = vmul.f32 %v4476_v34, %v2308_v36 }
0x1167   :  { %v2315_v39 = vmul.f32 %v4476_v34, %v2307_v37 }
0x1168   :  { %v5991_v41 = vadd.f32 %v4477_v38, %v2316_v12  ;;  %v6073_v12 = vld [vmem:[#allocation5 + $0x1] ss:$0 sm:$0xff] }
0x1169   :  { %v5989_v40 = vadd.f32 %v4477_v38, %v2315_v39 }
0x116b   :  { %4805 = vmatprep.mubr.msk.f32.mxu1 %vm253_vm0, %v5989_v40 }
0x116c   :  { %4806 = vmatmul.mubr.msk.f32.vlgmr.msra.gmra.mrb[24].mxu1 %vm253_vm0, %v5991_v41 }
0x116d   :  { %4810 = vmatprep.mubr.msk.f32.mxu1 %vm5507_vm1, %v5506_v8 }
0x123f   :  { %v4807_v43 = vpop.f32.mrb[24].mxu1 }
0x1240   :  { %v5999_v44 = vadd.f32 %v4807_v43, %v4478_v42  ;;  %v2410_v45 = vpop.f32.mrb[25].mxu1 }
0x1241   :  { %v6001_v46 = vadd.f32 %v4478_v42, %v2410_v45 }
0x1242   :  { %2504 = vrot.lane.b32.xlu0 %v5999_v44, %s5508_s13 }
0x1243   :  { %2427 = vrot.lane.b32.xlu1 %v6001_v46, %s5508_s13 }
0x12b4   :  { %v2505_v47 = vpop.permute.xlu0 %2504 }
0x12b5   :  { %v2428_v13 = vpop.permute.xlu1 %2427 }
0x12b6   :  { %4809 = vmatpush3.xpose.msk.msra.mxu1 %vm343_vm2, %v2428_v13 }
0x12b7   :  { %4813 = vmatprep.subr.mxu1 %v5506_v8 }
0x12b9   :  { %4811 = vmatmul.mubr.msk.f32.vlgmr.msra.gmra.mrb[26].mxu1 %vm343_vm2, %v6001_v46 }
0x12ba   :  { %4814 = vmatpush3.xpose.msk.msra.mxu1 %vm343_vm2, %v2505_v47  ;;  %4815 = vmatprep.mubr.msk.f32.mxu1 %vm5507_vm1, %v5506_v8 }
0x12bb   :  { %4823 = vmatprep.subr.mxu1 %v5506_v8 }
0x12bd   :  { %4816 = vmatmul.mubr.msk.f32.vlgmr.msra.gmra.mrb[28].mxu1 %vm343_vm2, %v5999_v44 }
0x12be   :  { %4825 = vmatprep.mubr.msk.f32.mxu1 %vm5507_vm1, %v5506_v8 }
0x138c   :  { %v2499_v48 = vpop.f32.mrb[26].mxu1 }
0x138d   :  { %v2580_v49 = vmul.f32 0.35355338, %v2499_v48  ;;  %v4812_v50 = vpop.f32.mrb[27].mxu1 }
0x138f   :  { %v2582_v51 = vadd.f32 %v5839_v17, %v2580_v49 }
0x1390   :  { %v2576_v52 = vpop.f32.mrb[28].mxu1 }
0x1391   :  { %v2581_v53 = vmul.f32 0.35355338, %v2576_v52  ;;  %v4817_v54 = vpop.f32.mrb[29].mxu1  ;;  %v2584_v55 = vsel %vm343_vm2, %v2582_v51, -inf }
0x1392   :  { %2585 = vmax.xlane.f32.xlu1 %v2584_v55 }
0x1393   :  { %v2583_v56 = vadd.f32 %v5842_v22, %v2581_v53 }
0x1395   :  { %v2587_v57 = vsel %vm343_vm2, %v2583_v56, -inf }
0x1396   :  { %2588 = vmax.xlane.f32.xlu0 %v2587_v57 }
0x141f   :  { %v2586_v58 = vpop.xlane.xlu1 %2585 }
0x1420   :  { %v2590_v59 = vsub.f32 %v2582_v51, %v2586_v58 }
0x1422   :  { %v2592_v60 = vmul.f32 1.442695, %v2590_v59 }
0x1423   :  { %v2589_v61 = vpop.xlane.xlu0 %2588 }
0x1424   :  { %5094 = vpow2.f32 %v2592_v60  ;;  %v2591_v62 = vsub.f32 %v2583_v56, %v2589_v61 }
0x1426   :  { %v2594_v63 = vmul.f32 1.442695, %v2591_v62 }
0x1428   :  { %5096 = vpow2.f32 %v2594_v63 }
0x142e   :  { %v5095_v17 = vpop.eup %5094 }
0x142f   :  { %v2596_v7 = vsel %vm343_vm2, %v5095_v17, 0.0 }
0x1430   :  { %2597 = vadd.xlane.f32.xlu1 %v2596_v7 }
0x1432   :  { %v5097_v5 = vpop.eup %5096 }
0x1433   :  { %v2599_v0 = vsel %vm343_vm2, %v5097_v5, 0.0 }
0x1434   :  { %2600 = vadd.xlane.f32.xlu0 %v2599_v0 }
0x1441   :  { %2606 = vrot.lane.b32.xlu1 %v6001_v46, %s5509_s23 }
0x1445   :  { %2849 = vrot.lane.b32.xlu1 %v6001_v46, %s5510_s24 }
0x1449   :  { %2847 = vrot.lane.b32.xlu1 %v6001_v46, %s5511_s8 }
0x144a   :  { %2682 = vrot.lane.b32.xlu0 %v5999_v44, %s5509_s23 }
0x144d   :  { %2925 = vrot.lane.b32.xlu1 %v5999_v44, %s5511_s8 }
0x144e   :  { %2927 = vrot.lane.b32.xlu0 %v5999_v44, %s5510_s24 }
0x1451   :  { %3266 = vrot.lane.b32.xlu1 %v6001_v46, %s5514_s19 }
0x14bd   :  { %v2598_v22 = vpop.xlane.xlu1 %2597 }
0x14be   :  { %5098 = vrcp.f32 %v2598_v22 }
0x14c1   :  { %v2607_v2 = vpop.permute.xlu1 %2606  ;;  %v2601_v3 = vpop.xlane.xlu0 %2600 }
0x14c2   :  { %5100 = vrcp.f32 %v2601_v3  ;;  %4819 = vmatpush3.msra.mxu0 %v2607_v2 }
0x14c3   :  { %4828 = vmatprep.subr.mxu0 %v2420_v1 }
0x14c5   :  { %v2683_v4 = vpop.permute.xlu0 %2682  ;;  %v2850_v11 = vpop.permute.xlu1 %2849 }
0x14c6   :  { %4824 = vmatpush3.msra.mxu1 %v2683_v4 }
0x14c7   :  { %4833 = vmatprep.subr.mxu1 %v5506_v8 }
0x14c8   :  { %v5099_v6 = vpop.eup %5098 }
0x14c9   :  { %v2604_v9 = vmul.f32 %v5099_v6, %v5095_v17  ;;  %v2848_v15 = vpop.permute.xlu1 %2847  ;;  %v2928_v20 = vpop.permute.xlu0 %2927  ;;  %v2421_v6 = vld [vmem:[#allocation10 + $0x28] sm:$0xff] }
0x14cb   :  { %4821 = vmatmul.mubr.msk.f32.vlgmr.msra.gmra.mrb[16].mxu0 %vm343_vm2, %v2604_v9 }
0x14cc   :  { %v5101_v10 = vpop.eup %5100  ;;  %4829 = vmatpush3.msra.mxu0 %v2420_v1 }
0x14cd   :  { %v2605_v14 = vmul.f32 %v5101_v10, %v5097_v5  ;;  %4838 = vmatprep.subr.mxu0 %v5506_v8  ;;  %v2926_v23 = vpop.permute.xlu1 %2925 }
0x14cf   :  { %4826 = vmatmul.mubr.msk.f32.vlgmr.msra.gmra.mrb[30].mxu1 %vm343_vm2, %v2605_v14 }
0x14d0   :  { %4834 = vmatpush3.xpose.msk.msra.mxu1 %vm343_vm2, %v2850_v11  ;;  %4835 = vmatprep.mubr.msk.f32.mxu1 %vm5507_vm1, %v5506_v8 }
0x14d1   :  { %4843 = vmatprep.subr.mxu1 %v5506_v8  ;;  %v3267_v43 = vpop.permute.xlu1 %3266 }
0x14d3   :  { %4836 = vmatmul.mubr.msk.f32.vlgmr.msra.gmra.mrb[32].mxu1 %vm343_vm2, %v2848_v15 }
0x14d4   :  { %4845 = vmatprep.mubr.msk.f32.mxu1 %vm5507_vm1, %v5506_v8 }
0x159e   :  { %v2678_v16 = vpop.f32.mrb[16].mxu0 }
0x159f   :  { %v4822_v18 = vpop.f32.mrb[17].mxu0  ;;  %4830 = vmatprep.mubr.msk.f32.mxu0 %vm343_vm2, %v2678_v16 }
0x15a2   :  { %v2754_v19 = vpop.f32.mrb[30].mxu1 }
0x15a3   :  { %v4827_v21 = vpop.f32.mrb[31].mxu1  ;;  %4831 = vmatmul.mubr.msk.f32.vlgmr.msra.gmra.mrb[18].mxu0 %vm343_vm2, %v2754_v19 }
0x15a4   :  { %4839 = vmatpush3.xpose.msk.msra.mxu0 %vm343_vm2, %v2928_v20  ;;  %4840 = vmatprep.mubr.msk.f32.mxu0 %vm5507_vm1, %v5506_v8 }
0x15a5   :  { %4848 = vmatprep.subr.mxu0 %v5506_v8 }
0x15a6   :  { %v2921_v24 = vpop.f32.mrb[32].mxu1 }
0x15a7   :  { %v3003_v25 = vmul.f32 0.35355338, %v2921_v24  ;;  %v4837_v26 = vpop.f32.mrb[33].mxu1  ;;  %4841 = vmatmul.mubr.msk.f32.vlgmr.msra.gmra.mrb[20].mxu0 %vm343_vm2, %v2926_v23 }
0x15a8   :  { %4850 = vmatprep.mubr.msk.f32.mxu0 %vm5507_vm1, %v5506_v8 }
0x15a9   :  { %v3005_v28 = vadd.f32 %v6059_v27, %v3003_v25 }
0x15ab   :  { %v3007_v29 = vsel %vm343_vm2, %v3005_v28, -inf }
0x15ac   :  { %3008 = vmax.xlane.f32.xlu0 %v3007_v29 }
0x15c2   :  { %3029 = vrot.lane.b32.xlu0 %v6001_v46, %s5512_s26 }
0x15c6   :  { %3264 = vrot.lane.b32.xlu0 %v6001_v46, %s5513_s15 }
0x15ca   :  { %3342 = vrot.lane.b32.xlu0 %v5999_v44, %s5513_s15 }
0x1639   :  { %v3009_v30 = vpop.xlane.xlu0 %3008 }
0x163a   :  { %v3013_v31 = vsub.f32 %v3005_v28, %v3009_v30  ;;  %v2422_v28 = vld [vmem:[#allocation10 + $0x30] sm:$0xff] }
0x163c   :  { %v3015_v32 = vmul.f32 1.442695, %v3013_v31 }
0x163d   :  { %v3030_v33 = vpop.permute.xlu0 %3029 }
0x163e   :  { %5102 = vpow2.f32 %v3015_v32  ;;  %4844 = vmatpush3.msra.mxu1 %v3030_v33 }
0x163f   :  { %4858 = vmatprep.subr.mxu1 %v5506_v8 }
0x1641   :  { %v3265_v48 = vpop.permute.xlu0 %3264 }
0x1645   :  { %v3343_v50 = vpop.permute.xlu0 %3342 }
0x1648   :  { %v5103_v34 = vpop.eup %5102 }
0x1649   :  { %v3019_v35 = vsel %vm343_vm2, %v5103_v34, 0.0 }
0x164a   :  { %3020 = vadd.xlane.f32.xlu1 %v3019_v35 }
0x165b   :  { %3344 = vrot.lane.b32.xlu1 %v5999_v44, %s5514_s19 }
0x167a   :  { %v2999_v36 = vpop.f32.mrb[20].mxu0 }
0x167b   :  { %v3004_v37 = vmul.f32 0.35355338, %v2999_v36  ;;  %v4842_v38 = vpop.f32.mrb[21].mxu0 }
0x167d   :  { %v3006_v39 = vadd.f32 %v6073_v12, %v3004_v37 }
0x167f   :  { %v3010_v42 = vsel %vm343_vm2, %v3006_v39, -inf }
0x1680   :  { %3011 = vmax.xlane.f32.xlu1 %v3010_v42 }
0x16d7   :  { %v3021_v45 = vpop.xlane.xlu1 %3020 }
0x16d8   :  { %5104 = vrcp.f32 %v3021_v45 }
0x16db   :  { %v3345_v49 = vpop.permute.xlu1 %3344 }
0x16e2   :  { %v5105_v13 = vpop.eup %5104 }
0x16e3   :  { %v3027_v47 = vmul.f32 %v5105_v13, %v5103_v34 }
0x16e5   :  { %4846 = vmatmul.mubr.msk.f32.vlgmr.msra.gmra.mrb[34].mxu1 %vm343_vm2, %v3027_v47 }
0x16e6   :  { %4859 = vmatpush3.xpose.msk.msra.mxu1 %vm343_vm2, %v3267_v43  ;;  %4860 = vmatprep.mubr.msk.f32.mxu1 %vm5507_vm1, %v5506_v8 }
0x16e7   :  { %4863 = vmatprep.subr.mxu1 %v5506_v8 }
0x16e9   :  { %4861 = vmatmul.mubr.msk.f32.vlgmr.msra.gmra.mrb[36].mxu1 %vm343_vm2, %v3265_v48 }
0x16ea   :  { %4864 = vmatpush3.xpose.msk.msra.mxu1 %vm343_vm2, %v3345_v49  ;;  %4865 = vmatprep.mubr.msk.f32.mxu1 %vm5507_vm1, %v5506_v8 }
0x16eb   :  { %4873 = vmatprep.subr.mxu1 %v5506_v8 }
0x16ed   :  { %4866 = vmatmul.mubr.msk.f32.vlgmr.msra.gmra.mrb[38].mxu1 %vm343_vm2, %v3343_v50 }
0x16ee   :  { %4875 = vmatprep.mubr.msk.f32.mxu1 %vm5507_vm1, %v5506_v8 }
0x170d   :  { %v3012_v51 = vpop.xlane.xlu1 %3011 }
0x170e   :  { %v3014_v52 = vsub.f32 %v3006_v39, %v3012_v51 }
0x1710   :  { %v3017_v53 = vmul.f32 1.442695, %v3014_v52 }
0x1712   :  { %5106 = vpow2.f32 %v3017_v53 }
0x171c   :  { %v5107_v54 = vpop.eup %5106 }
0x171d   :  { %v3022_v55 = vsel %vm343_vm2, %v5107_v54, 0.0 }
0x171e   :  { %3023 = vadd.xlane.f32.xlu0 %v3022_v55 }
0x1734   :  { %3105 = vrot.lane.b32.xlu0 %v5999_v44, %s5512_s26 }
0x1738   :  { %3522 = vrot.lane.b32.xlu0 %v5999_v44, %s5515_s20 }
0x173c   :  { %3683 = vrot.lane.b32.xlu0 %v6001_v46, %s5516_s28 }
0x1740   :  { %3761 = vrot.lane.b32.xlu0 %v5999_v44, %s5516_s28 }
0x1744   :  { %3681 = vrot.lane.b32.xlu0 %v6001_v46, %s5517_s9 }
0x17ab   :  { %v3024_v56 = vpop.xlane.xlu0 %3023 }
0x17ac   :  { %5108 = vrcp.f32 %v3024_v56 }
0x17af   :  { %v3106_v57 = vpop.permute.xlu0 %3105 }
0x17b0   :  { %4849 = vmatpush3.msra.mxu0 %v3106_v57 }
0x17b1   :  { %4853 = vmatprep.subr.mxu0 %v2421_v6 }
0x17b3   :  { %v3523_v58 = vpop.permute.xlu0 %3522 }
0x17b4   :  { %4874 = vmatpush3.msra.mxu1 %v3523_v58 }
0x17b5   :  { %4883 = vmatprep.subr.mxu1 %v5506_v8 }
0x17b6   :  { %v5109_v59 = vpop.eup %5108 }
0x17b7   :  { %v3028_v60 = vmul.f32 %v5109_v59, %v5107_v54  ;;  %v3684_v30 = vpop.permute.xlu0 %3683 }
0x17b8   :  { %v3101_v61 = vpop.f32.mrb[34].mxu1 }
0x17b9   :  { %v4847_v62 = vpop.f32.mrb[35].mxu1  ;;  %4851 = vmatmul.mubr.msk.f32.vlgmr.msra.gmra.mrb[22].mxu0 %vm343_vm2, %v3028_v60 }
0x17ba   :  { %4855 = vmatprep.mubr.msk.f32.mxu0 %vm343_vm2, %v3101_v61  ;;  %4854 = vmatpush3.msra.mxu0 %v2421_v6 }
0x17bb   :  { %4868 = vmatprep.subr.mxu0 %v5506_v8  ;;  %v3762_v34 = vpop.permute.xlu0 %3761 }
0x17bc   :  { %v3338_v63 = vpop.f32.mrb[36].mxu1 }
0x17bd   :  { %v3420_v17 = vmul.f32 0.35355338, %v3338_v63  ;;  %v4862_v7 = vpop.f32.mrb[37].mxu1 }
0x17bf   :  { %v3422_v5 = vadd.f32 %v6059_v27, %v3420_v17  ;;  %v3682_v36 = vpop.permute.xlu0 %3681 }
0x17c0   :  { %v3416_v0 = vpop.f32.mrb[38].mxu1 }
0x17c1   :  { %v3421_v22 = vmul.f32 0.35355338, %v3416_v0  ;;  %v4867_v1 = vpop.f32.mrb[39].mxu1  ;;  %v3424_v2 = vsel %vm343_vm2, %v3422_v5, -inf }
0x17c2   :  { %3425 = vmax.xlane.f32.xlu1 %v3424_v2 }
0x17c3   :  { %v3423_v3 = vadd.f32 %v6073_v12, %v3421_v22 }
0x17c5   :  { %v3427_v4 = vsel %vm343_vm2, %v3423_v3, -inf }
0x17c6   :  { %3428 = vmax.xlane.f32.xlu1 %v3427_v4 }
0x184f   :  { %v3426_v9 = vpop.xlane.xlu1 %3425 }
0x1850   :  { %v3430_v10 = vsub.f32 %v3422_v5, %v3426_v9  ;;  %v2423_v5 = vld [vmem:[#allocation10 + $0x38] sm:$0xff] }
0x1852   :  { %v3432_v11 = vmul.f32 1.442695, %v3430_v10 }
0x1853   :  { %v3429_v14 = vpop.xlane.xlu1 %3428 }
0x1854   :  { %5110 = vpow2.f32 %v3432_v11  ;;  %v3431_v15 = vsub.f32 %v3423_v3, %v3429_v14 }
0x1856   :  { %v3434_v16 = vmul.f32 1.442695, %v3431_v15 }
0x1858   :  { %5112 = vpow2.f32 %v3434_v16 }
0x185e   :  { %v5111_v18 = vpop.eup %5110 }
0x185f   :  { %v3436_v19 = vsel %vm343_vm2, %v5111_v18, 0.0 }
0x1860   :  { %3437 = vadd.xlane.f32.xlu1 %v3436_v19 }
0x1862   :  { %v5113_v20 = vpop.eup %5112 }
0x1863   :  { %v3439_v21 = vsel %vm343_vm2, %v5113_v20, 0.0 }
0x1864   :  { %3440 = vadd.xlane.f32.xlu1 %v3439_v21 }
0x1875   :  { %3446 = vrot.lane.b32.xlu1 %v6001_v46, %s5515_s20 }
0x1879   :  { %3759 = vrot.lane.b32.xlu1 %v5999_v44, %s5517_s9 }
0x188c   :  { %v3177_v23 = vpop.f32.mrb[22].mxu0 }
0x188d   :  { %v4852_v24 = vpop.f32.mrb[23].mxu0  ;;  %4856 = vmatmul.mubr.msk.f32.vlgmr.msra.gmra.mrb[18].mxu0 %vm343_vm2, %v3177_v23 }
0x188e   :  { %4870 = vmatprep.mubr.msk.f32.mxu0 %vm5507_vm1, %v5506_v8 }
0x18ed   :  { %v3438_v25 = vpop.xlane.xlu1 %3437 }
0x18ee   :  { %5114 = vrcp.f32 %v3438_v25 }
0x18f1   :  { %v3441_v26 = vpop.xlane.xlu1 %3440 }
0x18f2   :  { %5116 = vrcp.f32 %v3441_v26 }
0x18f5   :  { %v3447_v29 = vpop.permute.xlu1 %3446 }
0x18f6   :  { %4869 = vmatpush3.msra.mxu0 %v3447_v29 }
0x18f7   :  { %4878 = vmatprep.subr.mxu0 %v2422_v28 }
0x18f8   :  { %v5115_v31 = vpop.eup %5114 }
0x18f9   :  { %v3444_v32 = vmul.f32 %v5115_v31, %v5111_v18  ;;  %v3760_v43 = vpop.permute.xlu1 %3759  ;;  %v4148_v31 = vld [vmem:[#allocation16 + $0x28] sm:$0xff] }
0x18fb   :  { %4871 = vmatmul.mubr.msk.f32.vlgmr.msra.gmra.mrb[24].mxu0 %vm343_vm2, %v3444_v32 }
0x18fc   :  { %v5117_v33 = vpop.eup %5116  ;;  %4879 = vmatpush3.msra.mxu0 %v2422_v28 }
0x18fd   :  { %v3445_v35 = vmul.f32 %v5117_v33, %v5113_v20  ;;  %4888 = vmatprep.subr.mxu0 %v5506_v8  ;;  %v4149_v33 = vld [vmem:[#allocation16 + $0x30] sm:$0xff] }
0x18ff   :  { %4876 = vmatmul.mubr.msk.f32.vlgmr.msra.gmra.mrb[40].mxu1 %vm343_vm2, %v3445_v35 }
0x1900   :  { %4884 = vmatpush3.xpose.msk.msra.mxu1 %vm343_vm2, %v3684_v30  ;;  %4885 = vmatprep.mubr.msk.f32.mxu1 %vm5507_vm1, %v5506_v8 }
0x1901   :  { %4893 = vmatprep.subr.mxu1 %v5506_v8 }
0x1903   :  { %4886 = vmatmul.mubr.msk.f32.vlgmr.msra.gmra.mrb[42].mxu1 %vm343_vm2, %v3682_v36 }
0x1904   :  { %4895 = vmatprep.mubr.msk.f32.mxu1 %vm5507_vm1, %v5506_v8 }
0x19ce   :  { %v3518_v37 = vpop.f32.mrb[24].mxu0 }
0x19cf   :  { %v4872_v38 = vpop.f32.mrb[25].mxu0  ;;  %4880 = vmatprep.mubr.msk.f32.mxu0 %vm343_vm2, %v3518_v37 }
0x19d2   :  { %v3594_v39 = vpop.f32.mrb[40].mxu1 }
0x19d3   :  { %v4877_v42 = vpop.f32.mrb[41].mxu1  ;;  %4881 = vmatmul.mubr.msk.f32.vlgmr.msra.gmra.mrb[18].mxu0 %vm343_vm2, %v3594_v39 }
0x19d4   :  { %4889 = vmatpush3.xpose.msk.msra.mxu0 %vm343_vm2, %v3762_v34  ;;  %4890 = vmatprep.mubr.msk.f32.mxu0 %vm5507_vm1, %v5506_v8  ;;  %v4150_v34 = vld [vmem:[#allocation16 + $0x38] sm:$0xff] }
0x19d5   :  { %4898 = vmatprep.subr.mxu0 %v5506_v8  ;;  %v4982_v35 = vpack.c.bf16 %v4150_v34, %v4149_v33 }
0x19d6   :  { %v3755_v45 = vpop.f32.mrb[42].mxu1 }
0x19d7   :  { %v3837_v13 = vmul.f32 0.35355338, %v3755_v45  ;;  %v4887_v47 = vpop.f32.mrb[43].mxu1  ;;  %4891 = vmatmul.mubr.msk.f32.vlgmr.msra.gmra.mrb[26].mxu0 %vm343_vm2, %v3760_v43 }
0x19d8   :  { %4900 = vmatprep.mubr.msk.f32.mxu0 %vm5507_vm1, %v5506_v8 }
0x19d9   :  { %v3839_v48 = vadd.f32 %v6059_v27, %v3837_v13  ;;  %v4514_v13 = vld [vmem:[#allocation13 + $0x1] ss:$0 sm:$0xff] }
0x19db   :  { %v3841_v49 = vsel %vm343_vm2, %v3839_v48, -inf }
0x19dc   :  { %3842 = vmax.xlane.f32.xlu0 %v3841_v49 }
0x1a69   :  { %v3843_v50 = vpop.xlane.xlu0 %3842 }
0x1a6a   :  { %v3847_v51 = vsub.f32 %v3839_v48, %v3843_v50  ;;  %v4515_v50 = vld [vmem:[#allocation14 + $0x1] ss:$0 sm:$0xff] }
0x1a6c   :  { %v3849_v52 = vmul.f32 1.442695, %v3847_v51 }
0x1a6e   :  { %5118 = vpow2.f32 %v3849_v52 }
0x1a78   :  { %v5119_v53 = vpop.eup %5118 }
0x1a79   :  { %v3853_v54 = vsel %vm343_vm2, %v5119_v53, 0.0 }
0x1a7a   :  { %3854 = vadd.xlane.f32.xlu0 %v3853_v54 }
0x1aaa   :  { %v3833_v55 = vpop.f32.mrb[26].mxu0 }
0x1aab   :  { %v3838_v56 = vmul.f32 0.35355338, %v3833_v55  ;;  %v4892_v57 = vpop.f32.mrb[27].mxu0  ;;  %v4259_v55 = vld [vmem:[#allocation19 + $0x40] sm:$0xff] }
0x1aad   :  { %v3840_v58 = vadd.f32 %v6073_v12, %v3838_v56  ;;  %v4260_v56 = vld [vmem:[#allocation19 + $0x48] sm:$0xff] }
0x1aae   :  { %v4986_v57 = vpack.c.bf16 %v4260_v56, %v4259_v55  ;;  %v4523_v56 = vld [vmem:[#allocation23 + $0x1] ss:$0 sm:$0xff] }
0x1aaf   :  { %v3844_v8 = vsel %vm343_vm2, %v3840_v58, -inf }
0x1ab0   :  { %3845 = vmax.xlane.f32.xlu1 %v3844_v8  ;;  %v4262_v8 = vld [vmem:[#allocation19 + $0x58] sm:$0xff] }
0x1ac1   :  { %3863 = vrot.lane.b32.xlu1 %v6001_v46, %s5518_s2 }
0x1b07   :  { %v3855_v27 = vpop.xlane.xlu0 %3854 }
0x1b08   :  { %5120 = vrcp.f32 %v3855_v27 }
0x1b12   :  { %v5121_v60 = vpop.eup %5120 }
0x1b13   :  { %v3861_v63 = vmul.f32 %v5121_v60, %v5119_v53  ;;  %v4264_v60 = vld [vmem:[#allocation19 + $0x68] sm:$0xff] }
0x1b3d   :  { %v3846_v59 = vpop.xlane.xlu1 %3845 }
0x1b3e   :  { %v3848_v61 = vsub.f32 %v3840_v58, %v3846_v59  ;;  %v4261_v58 = vld [vmem:[#allocation19 + $0x50] sm:$0xff]  ;;  %v4263_v59 = vld [vmem:[#allocation19 + $0x60] sm:$0xff] }
0x1b3f   :  { %v4990_v27 = vpack.c.bf16 %v4262_v8, %v4261_v58 }
0x1b40   :  { %v3851_v62 = vmul.f32 1.442695, %v3848_v61  ;;  %v4994_v61 = vpack.c.bf16 %v4264_v60, %v4263_v59 }
0x1b41   :  { %v3864_v17 = vpop.permute.xlu1 %3863 }
0x1b42   :  { %5122 = vpow2.f32 %v3851_v62  ;;  %4894 = vmatpush3.msra.mxu1 %v3864_v17  ;;  %v4265_v62 = vld [vmem:[#allocation19 + $0x70] sm:$0xff] }
0x1b43   :  { %4896 = vmatmul.mubr.msk.f32.vlgmr.msra.gmra.mrb[44].mxu1 %vm343_vm2, %v3861_v63  ;;  %v4266_v63 = vld [vmem:[#allocation19 + $0x78] sm:$0xff] }
0x1b44   :  { %v4998_v17 = vpack.c.bf16 %v4266_v63, %v4265_v62 }
0x1b4c   :  { %v5123_v7 = vpop.eup %5122 }
0x1b4d   :  { %v3856_v12 = vsel %vm343_vm2, %v5123_v7, 0.0 }
0x1b4e   :  { %3857 = vadd.xlane.f32.xlu0 %v3856_v12 }
0x1b64   :  { %3939 = vrot.lane.b32.xlu0 %v5999_v44, %s5518_s2  ;;  %v4489_v44 = vld [vmem:[#allocation11 + $0x1] ss:$0 sm:$0xff] }
0x1bdb   :  { %v3858_v46 = vpop.xlane.xlu0 %3857 }
0x1bdc   :  { %5124 = vrcp.f32 %v3858_v46 }
0x1bdf   :  { %v3940_v0 = vpop.permute.xlu0 %3939 }
0x1be0   :  { %4899 = vmatpush3.msra.mxu0 %v3940_v0 }
0x1be1   :  { %4903 = vmatprep.subr.mxu0 %v2423_v5 }
0x1be6   :  { %v5125_v22 = vpop.eup %5124 }
0x1be7   :  { %v3862_v1 = vmul.f32 %v5125_v22, %v5123_v7  ;;  %v4516_v7 = vld [vmem:[#allocation17 + $0x1] ss:$0 sm:$0xff] }
0x1be9   :  { %4901 = vmatmul.mubr.msk.f32.vlgmr.msra.gmra.mrb[28].mxu0 %vm343_vm2, %v3862_v1 }
0x1bea   :  { %4904 = vmatpush3.msra.mxu0 %v2423_v5 }
0x1beb   :  { %4987 = vmatprep.subr.bf16.mxu0 %v4986_v57 }
0x1c16   :  { %v3935_v2 = vpop.f32.mrb[44].mxu1 }
0x1c17   :  { %v4897_v3 = vpop.f32.mrb[45].mxu1  ;;  %4905 = vmatprep.mubr.msk.f32.mxu0 %vm343_vm2, %v3935_v2 }
0x1cbc   :  { %v4011_v4 = vpop.f32.mrb[28].mxu0 }
0x1cbd   :  { %v4902_v6 = vpop.f32.mrb[29].mxu0  ;;  %4906 = vmatmul.mubr.msk.f32.vlgmr.msra.gmra.mrb[18].mxu0 %vm343_vm2, %v4011_v4 }
0x1cbe   :  { %4989 = vmatpush3.bf16.msra.mxu0 %v4986_v57 }
0x1cbf   :  { %4991 = vmatprep.subr.bf16.mxu0 %v4990_v27 }
0x1cc2   :  { %4993 = vmatpush3.bf16.msra.mxu0 %v4990_v27 }
0x1cc3   :  { %4995 = vmatprep.subr.bf16.mxu0 %v4994_v61 }
0x1cc6   :  { %4997 = vmatpush3.bf16.msra.mxu0 %v4994_v61 }
0x1cc7   :  { %4999 = vmatprep.subr.bf16.mxu0 %v4998_v17 }
0x1cca   :  { %5001 = vmatpush3.bf16.msra.mxu0 %v4998_v17 }
0x1d90   :  { %v4907_v9 = vpop.f32.mrb[18].mxu0 }
0x1d91   :  { %v5004_v10 = vadd.f32 %v4907_v9, %v4489_v44  ;;  %v4087_v11 = vpop.f32.mrb[19].mxu0 }
0x1d92   :  { %v5005_v14 = vadd.f32 %v4489_v44, %v4087_v11 }
0x1d93   :  { %v4099_v15 = vadd.f32 %v5004_v10, %v5991_v41 }
0x1d94   :  { %v4098_v16 = vadd.f32 %v5005_v14, %v5989_v40  ;;  %v4147_v40 = vld [vmem:[#allocation16 + $0x20] sm:$0xff] }
0x1d95   :  { %v4107_v18 = vsel %vm253_vm0, %v4099_v15, 0.0  ;;  %v4978_v32 = vpack.c.bf16 %v4148_v31, %v4147_v40 }
0x1d96   :  { %4108 = vadd.xlane.f32.xlu0 %v4107_v18  ;;  %v4104_v19 = vsel %vm253_vm0, %v4098_v16, 0.0 }
0x1d97   :  { %4105 = vadd.xlane.f32.xlu1 %v4104_v19  ;;  %4979 = vmatprep.subr.bf16.mxu1 %v4978_v32 }
0x1d98   :  { %4981 = vmatpush3.bf16.msra.mxu1 %v4978_v32 }
0x1d99   :  { %4983 = vmatprep.subr.bf16.mxu1 %v4982_v35 }
0x1d9c   :  { %4985 = vmatpush3.bf16.msra.mxu1 %v4982_v35 }
0x1e23   :  { %v4109_v20 = vpop.xlane.xlu0 %4108 }
0x1e24   :  { %v4111_v21 = vmul.f32 0.03125, %v4109_v20  ;;  %v4106_v23 = vpop.xlane.xlu1 %4105 }
0x1e25   :  { %v4110_v24 = vmul.f32 0.03125, %v4106_v23 }
0x1e26   :  { %v4113_v25 = vsub.f32 %v4099_v15, %v4111_v21 }
0x1e27   :  { %v4112_v26 = vsub.f32 %v4098_v16, %v4110_v24  ;;  %v4519_v24 = vld [vmem:[#allocation20 + $0x1] ss:$0 sm:$0xff] }
0x1e28   :  { %v4115_v28 = vmul.f32 %v4113_v25, %v4113_v25 }
0x1e29   :  { %v4114_v29 = vmul.f32 %v4112_v26, %v4112_v26 }
0x1e2a   :  { %v4119_v30 = vsel %vm253_vm0, %v4115_v28, 0.0 }
0x1e2b   :  { %4120 = vadd.xlane.f32.xlu0 %v4119_v30  ;;  %v4116_v41 = vsel %vm253_vm0, %v4114_v29, 0.0 }
0x1e2c   :  { %4117 = vadd.xlane.f32.xlu1 %v4116_v41 }
0x1eb8   :  { %v4121_v36 = vpop.xlane.xlu0 %4120 }
0x1eb9   :  { %v4123_v37 = vmul.f32 0.03125, %v4121_v36  ;;  %v4118_v38 = vpop.xlane.xlu1 %4117 }
0x1eba   :  { %v4122_v39 = vmul.f32 0.03125, %v4118_v38 }
0x1ebb   :  { %v4125_v42 = vadd.f32 1e-12, %v4123_v37 }
0x1ebc   :  { %v4124_v43 = vadd.f32 1e-12, %v4122_v39 }
0x1ebd   :  { %5126 = vrsqrt.f32 %v4125_v42 }
0x1ebe   :  { %5128 = vrsqrt.f32 %v4124_v43 }
0x1ec7   :  { %v5127_v45 = vpop.eup %5126 }
0x1ec8   :  { %v5129_v47 = vpop.eup %5128  ;;  %v4129_v48 = vmul.f32 %v5127_v45, %v4113_v25 }
0x1ec9   :  { %v4128_v49 = vmul.f32 %v5129_v47, %v4112_v26 }
0x1eca   :  { %v4137_v51 = vmul.f32 %v4514_v13, %v4129_v48 }
0x1ecb   :  { %v4136_v52 = vmul.f32 %v4514_v13, %v4128_v49 }
0x1ecc   :  { %v4145_v54 = vadd.f32 %v4515_v50, %v4137_v51 }
0x1ecd   :  { %v4144_v53 = vadd.f32 %v4515_v50, %v4136_v52  ;;  %v4522_v52 = vld [vmem:[#allocation22 + $0x1] ss:$0 sm:$0xff] }
0x1ecf   :  { %4916 = vmatprep.mubr.msk.f32.mxu1 %vm253_vm0, %v4144_v53 }
0x1ed0   :  { %4917 = vmatmul.mubr.msk.f32.vlgmr.msra.gmra.mrb[46].mxu1 %vm253_vm0, %v4145_v54 }
0x1fa3   :  { %v4918_v12 = vpop.f32.mrb[46].mxu1 }
0x1fa4   :  { %v4237_v46 = vadd.f32 %v4918_v12, %v4516_v7  ;;  %v4231_v5 = vpop.f32.mrb[47].mxu1 }
0x1fa5   :  { %v4232_v0 = vadd.f32 %v4516_v7, %v4231_v5 }
0x1fa6   :  { %v4243_v22 = vmul.f32 0.044715, %v4237_v46  ;;  %v4241_v20 = vmul.f32 0.5, %v4237_v46 }
0x1fa7   :  { %v4242_v1 = vmul.f32 0.044715, %v4232_v0  ;;  %v4240_v18 = vmul.f32 0.5, %v4232_v0 }
0x1fa8   :  { %v4245_v2 = vmul.f32 %v4243_v22, %v4237_v46 }
0x1fa9   :  { %v4244_v3 = vmul.f32 %v4242_v1, %v4232_v0 }
0x1faa   :  { %v4247_v4 = vmul.f32 %v4245_v2, %v4237_v46 }
0x1fab   :  { %v4246_v6 = vmul.f32 %v4244_v3, %v4232_v0 }
0x1fac   :  { %v4249_v44 = vadd.f32 %v4247_v4, %v4237_v46 }
0x1fad   :  { %v4248_v9 = vadd.f32 %v4246_v6, %v4232_v0 }
0x1fae   :  { %v4251_v10 = vmul.f32 0.7978846, %v4249_v44 }
0x1faf   :  { %v4250_v11 = vmul.f32 0.7978846, %v4248_v9 }
0x1fb0   :  { %5130 = vtanh.f32 %v4251_v10 }
0x1fb1   :  { %5132 = vtanh.f32 %v4250_v11 }
0x1fba   :  { %v5131_v14 = vpop.eup %5130 }
0x1fbb   :  { %v5133_v15 = vpop.eup %5132  ;;  %v4255_v16 = vadd.f32 1.0, %v5131_v14 }
0x1fbc   :  { %v4254_v19 = vadd.f32 1.0, %v5133_v15 }
0x1fbd   :  { %v4257_v23 = vmul.f32 %v4255_v16, %v4241_v20 }
0x1fbe   :  { %v4256_v21 = vmul.f32 %v4254_v19, %v4240_v18 }
0x1fc0   :  { %4935 = vmatprep.mubr.msk.f32.mxu0 %vm2197_vm3, %v4256_v21 }
0x1fc1   :  { %4936 = vmatmul.mubr.msk.f32.vlgmr.msra.gmra.mrb[30].mxu0 %vm2197_vm3, %v4257_v23 }
0x2094   :  { %v4937_v25 = vpop.f32.mrb[30].mxu0 }
0x2095   :  { %v4353_v26 = vadd.f32 %v4937_v25, %v4519_v24  ;;  %v4347_v28 = vpop.f32.mrb[31].mxu0 }
0x2096   :  { %v4348_v29 = vadd.f32 %v4519_v24, %v4347_v28 }
0x2097   :  { %v4357_v30 = vadd.f32 %v4353_v26, %v4145_v54 }
0x2098   :  { %v4356_v41 = vadd.f32 %v4348_v29, %v4144_v53 }
0x2099   :  { %v4365_v40 = vsel %vm253_vm0, %v4357_v30, 0.0 }
0x209a   :  { %4366 = vadd.xlane.f32.xlu0 %v4365_v40  ;;  %v4362_v31 = vsel %vm253_vm0, %v4356_v41, 0.0 }
0x209b   :  { %4363 = vadd.xlane.f32.xlu1 %v4362_v31 }
0x2127   :  { %v4367_v32 = vpop.xlane.xlu0 %4366 }
0x2128   :  { %v4369_v33 = vmul.f32 0.03125, %v4367_v32  ;;  %v4364_v34 = vpop.xlane.xlu1 %4363 }
0x2129   :  { %v4368_v35 = vmul.f32 0.03125, %v4364_v34 }
0x212a   :  { %v4371_v36 = vsub.f32 %v4357_v30, %v4369_v33 }
0x212b   :  { %v4370_v37 = vsub.f32 %v4356_v41, %v4368_v35 }
0x212c   :  { %v4373_v38 = vmul.f32 %v4371_v36, %v4371_v36 }
0x212d   :  { %v4372_v39 = vmul.f32 %v4370_v37, %v4370_v37 }
0x212e   :  { %v4377_v42 = vsel %vm253_vm0, %v4373_v38, 0.0 }
0x212f   :  { %4378 = vadd.xlane.f32.xlu0 %v4377_v42  ;;  %v4374_v43 = vsel %vm253_vm0, %v4372_v39, 0.0 }
0x2130   :  { %4375 = vadd.xlane.f32.xlu1 %v4374_v43 }
0x21bc   :  { %v4379_v45 = vpop.xlane.xlu0 %4378 }
0x21bd   :  { %v4381_v13 = vmul.f32 0.03125, %v4379_v45  ;;  %v4376_v47 = vpop.xlane.xlu1 %4375 }
0x21be   :  { %v4380_v48 = vmul.f32 0.03125, %v4376_v47 }
0x21bf   :  { %v4383_v49 = vadd.f32 1e-12, %v4381_v13 }
0x21c0   :  { %v4382_v50 = vadd.f32 1e-12, %v4380_v48 }
0x21c1   :  { %5134 = vrsqrt.f32 %v4383_v49 }
0x21c2   :  { %5136 = vrsqrt.f32 %v4382_v50 }
0x21cb   :  { %v5135_v51 = vpop.eup %5134 }
0x21cc   :  { %v5137_v53 = vpop.eup %5136  ;;  %v4387_v54 = vmul.f32 %v5135_v51, %v4371_v36 }
0x21cd   :  { %v4386_v55 = vmul.f32 %v5137_v53, %v4370_v37 }
0x21ce   :  { %v4395_v57 = vmul.f32 %v4522_v52, %v4387_v54 }
0x21cf   :  { %v4394_v58 = vmul.f32 %v4522_v52, %v4386_v55 }
0x21d0   :  { %v4403_v8 = vadd.f32 %v4523_v56, %v4395_v57 }
0x21d1   :  { %v4402_v27 = vadd.f32 %v4523_v56, %v4394_v58 }
0x21d2   :  { %4405 = vst.msk [vmem:[#allocation25 + $0x8] sm:$0xff] %vm253_vm0, %v4403_v8 }
0x21d3   :  { %4404 = vst.msk [vmem:[#allocation25] sm:$0xff] %vm253_vm0, %v4402_v27 }
0x21d4   :  { %5459 = shalt.err (!%p5456_p4)
}
0x21d5   :  { %s5460_s25 = scalar_lea.hbm %s6196_s14, 256 }
0x21d6   :  { %p5461_p5 = scmp.ne.s32.totalorder %s6196_s14, %s5460_s25  ;;  %p5464_p6 = scmp.lt.u32.totalorder %s5460_s25, %s6196_s14 }
0x21d8   :  { %p5466_p7 = pnand %p5464_p6, %p5461_p5 }
0x21da   :  { %5469 = shalt.err (!%p5466_p7)
}
0x21db   :  { %4417 = dma.vmem_to_hbm [thread:$0]  %s4412_s30, 256, %s6196_s14, [#allocation4], %s5497_s11, %s5497_s11, %s5498_s16  }
0x21dc   :  { %5486 = dma.done.wait [#allocation4], 256  }
0x21dd   :  { %5487 = vsyncadd [#allocation4], 4294967040 }
0x21de   :  { %4421 = vsyncpa [#allocation3], 1 }
0x21df   :  { %4422 = vsyncpa [#allocation6], 1 }
0x21e0   :  { %4423 = vsyncpa [#allocation9], 1 }
0x21e1   :  { %4424 = vsyncpa [#allocation12], 1 }
0x21e2   :  { %4425 = vsyncpa [#allocation15], 1 }
0x21e3   :  { %4426 = vsyncpa [#allocation18], 1 }
0x21e4   :  { %4427 = vsyncpa [#allocation21], 1 }
0x21e5   :  { %4428 = vsyncpa [#allocation24], 1 }
0x21e6   :  { %4429 = vsyncpa [#allocation4], 1 }

</bundles_post_ra>
